<compile_context>
chip_gen: v7x
topology: tpu7x:2x2x1
jax: 0.10.0
libtpu: 0.0.40
codegen_flags: <defaults>
</compile_context>

<pallas_src>
import math

import jax
import jax.numpy as jnp
from jax.experimental import pallas as pl
from jax.experimental.pallas import tpu as pltpu


def _round_up(x, m):
    return ((x + m - 1) // m) * m


# ----------------------------------------------------------------------------
# Kernel
# ----------------------------------------------------------------------------
def _feature_fusion_kernel(intr_ref, trans_ref, temp_ref,
                           wi_ref, wt_ref, wtemp_ref,
                           wg1a_ref, wg1b_ref, wg1c_ref,
                           wg2_ref, wo_ref, b_ref,
                           out_ref):
    f32 = jnp.float32
    dt = wi_ref.dtype  # compute dtype fed to the MXU

    # Branch projections (operands in native compute dtype, f32 accumulation).
    it = jnp.dot(intr_ref[...], wi_ref[...], preferred_element_type=f32) + b_ref[0:1, :]
    tt = jnp.dot(trans_ref[...], wt_ref[...], preferred_element_type=f32) + b_ref[1:2, :]
    # Temporal branch: all T per-step Linears + mean fused into one K = T*Dp dot
    # (1/T and the summed biases were folded in at pack time).
    ft = jnp.dot(temp_ref[...], wtemp_ref[...], preferred_element_type=f32) + b_ref[2:3, :]

    it_c = it.astype(dt)
    tt_c = tt.astype(dt)
    ft_c = ft.astype(dt)

    # Gate MLP on concat([it, tt, ft], -1) WITHOUT materializing the concat:
    # wg1 was split into three (Dp, Dp) blocks, MXU accumulates the three dots.
    h = jnp.dot(it_c, wg1a_ref[...], preferred_element_type=f32)
    h = h + jnp.dot(tt_c, wg1b_ref[...], preferred_element_type=f32)
    h = h + jnp.dot(ft_c, wg1c_ref[...], preferred_element_type=f32)
    h = jnp.maximum(h + b_ref[3:4, :], 0.0)                         # ReLU
    g = jax.nn.sigmoid(
        jnp.dot(h.astype(dt), wg2_ref[...], preferred_element_type=f32)
        + b_ref[4:5, :])                                            # Sigmoid

    # g*it + (1-g)*tt + ft  ==  tt + g*(it - tt) + ft   (one fewer VPU mul)
    fused = tt + g * (it - tt) + ft

    out = jnp.dot(fused.astype(dt), wo_ref[...], preferred_element_type=f32) + b_ref[5:6, :]
    out_ref[...] = out.astype(out_ref.dtype)


# ----------------------------------------------------------------------------
# One-time parameter packing (call once, outside the per-forward path)
# ----------------------------------------------------------------------------
def pack_params(params, input_dim, time_steps, compute_dtype=jnp.bfloat16):
    """Pad weights to lane-dense Dp, fuse temporal mean, split gate, pack biases."""
    D, T = input_dim, time_steps
    Dp = _round_up(max(D, 1), 128)
    dt = jnp.dtype(compute_dtype)
    f32 = jnp.float32

    def pad_mat(w, rows, cols):
        return jnp.zeros((rows, cols), f32).at[:w.shape[0], :w.shape[1]].set(w.astype(f32))

    wi = pad_mat(params["wi"], Dp, Dp)
    wt = pad_mat(params["wt"], Dp, Dp)
    wg2 = pad_mat(params["wg2"], Dp, Dp)
    wo = pad_mat(params["wo"], Dp, Dp)

    # Temporal: T stacked (D, D) weights -> one (T*Dp, Dp) matrix, 1/T folded in.
    wtemp = jnp.zeros((T * Dp, Dp), f32)
    for t in range(T):
        wtemp = wtemp.at[t * Dp:t * Dp + D, :D].set(params["wtemp"][t].astype(f32) / T)

    # Gate first layer: forward() only uses the first 3*D rows; split into three
    # (Dp, Dp) blocks so the kernel never materializes the concatenation.
    wg1 = params["wg1"].astype(f32)

    def gate_block(j):
        return jnp.zeros((Dp, Dp), f32).at[:D, :D].set(wg1[j * D:(j + 1) * D, :])

    wg1a, wg1b, wg1c = gate_block(0), gate_block(1), gate_block(2)

    # All biases packed into one sublane-aligned (8, Dp) f32 array.
    # rows: 0=bi 1=bt 2=btemp(sum/T) 3=bg1 4=bg2 5=bo  (rows 6-7 unused padding)
    biases = jnp.zeros((8, Dp), f32)
    biases = biases.at[0, :D].set(params["bi"].reshape(-1).astype(f32))
    biases = biases.at[1, :D].set(params["bt"].reshape(-1).astype(f32))
    biases = biases.at[2, :D].set(params["btemp"].astype(f32).sum(axis=0) / T)
    biases = biases.at[3, :D].set(params["bg1"].reshape(-1).astype(f32))
    biases = biases.at[4, :D].set(params["bg2"].reshape(-1).astype(f32))
    biases = biases.at[5, :D].set(params["bo"].reshape(-1).astype(f32))

    mats = dict(wi=wi, wt=wt, wtemp=wtemp, wg1a=wg1a, wg1b=wg1b, wg1c=wg1c,
                wg2=wg2, wo=wo)
    packed = {k: v.astype(dt) for k, v in mats.items()}
    packed["biases"] = biases  # biases stay f32 (added to f32 accumulators)
    return packed


# ----------------------------------------------------------------------------
# Forward wrapper
# ----------------------------------------------------------------------------
_WEIGHT_ORDER = ("wi", "wt", "wtemp", "wg1a", "wg1b", "wg1c", "wg2", "wo", "biases")


def feature_fusion(intrinsic, transferred, temporal, packed, *, tile_n=512):
    N, D = intrinsic.shape
    T = temporal.shape[1]
    Dp = packed["wi"].shape[0]
    dt = packed["wi"].dtype
    out_dtype = intrinsic.dtype
    assert packed["wtemp"].shape[0] == T * Dp, "packed params built for a different T"

    # Rows only need 8-alignment; pl.cdiv handles a partial last tile (rows are
    # independent, garbage edge rows are sliced off below).
    Np = _round_up(max(N, 1), 8)
    tile_n = _round_up(max(8, min(tile_n, Np)), 8)
    if Np >= 16 and tile_n >= Np:
        # Guarantee >= 2 grid steps so both TensorCores are used on v7x.
        tile_n = _round_up(max(8, (Np + 1) // 2), 8)
    grid = pl.cdiv(Np, tile_n)

    # Activation padding: rows -> Np, features -> lane-dense Dp; temporal is
    # flattened to (Np, T*Dp) so the temporal branch is one matmul.
    intr_p = jnp.pad(intrinsic.astype(dt), ((0, Np - N), (0, Dp - D)))
    trans_p = jnp.pad(transferred.astype(dt), ((0, Np - N), (0, Dp - D)))
    temp_p = jnp.pad(temporal.astype(dt),
                     ((0, Np - N), (0, 0), (0, Dp - D))).reshape(Np, T * Dp)

    row_spec = pl.BlockSpec((tile_n, Dp), lambda i: (i, 0))
    temp_spec = pl.BlockSpec((tile_n, T * Dp), lambda i: (i, 0))

    def resident_spec(arr):
        # Constant index_map -> weight stays VMEM-resident; single-buffer it.
        nd = arr.ndim
        return pl.BlockSpec(arr.shape, lambda i, _nd=nd: (0,) * _nd,
                            pipeline_mode=pl.Buffered(1))

    weight_args = [packed[k] for k in _WEIGHT_ORDER]
    weight_specs = [resident_spec(a) for a in weight_args]

    # Explicit, generation-aware VMEM budget: weights once (single-buffered) +
    # double-buffered activation/output tiles + slack, capped by the chip.
    act_itemsize = jnp.dtype(dt).itemsize
    weight_bytes = sum(int(a.size) * a.dtype.itemsize for a in weight_args)
    act_bytes = (2 * tile_n * Dp + tile_n * T * Dp) * act_itemsize
    out_bytes = tile_n * Dp * jnp.dtype(out_dtype).itemsize
    vmem_needed = weight_bytes + 2 * (act_bytes + out_bytes) + (2 << 20)
    try:
        vmem_cap = int(getattr(pltpu.get_tpu_info(), "vmem_capacity_bytes", 64 << 20))
    except Exception:  # e.g. no hardware query available
        vmem_cap = 64 << 20
    vmem_limit = int(min(max(vmem_needed, 16 << 20), max(16 << 20, vmem_cap - (4 << 20))))

    out = pl.pallas_call(
        _feature_fusion_kernel,
        out_shape=jax.ShapeDtypeStruct((Np, Dp), out_dtype),
        grid=(grid,),
        in_specs=[row_spec, row_spec, temp_spec] + weight_specs,
        out_specs=row_spec,
        compiler_params=pltpu.CompilerParams(
            dimension_semantics=("parallel",),
            vmem_limit_bytes=vmem_limit),
    )(intr_p, trans_p, temp_p, *weight_args)

    return out[:N, :D]


# ----------------------------------------------------------------------------
# Init + pure-JAX reference (PyTorch-Linear-style, weights stored as (in, out))
# ----------------------------------------------------------------------------
def init_params(key, input_dim, time_steps):
    def linear(key, fan_in, fan_out):
        kw, kb = jax.random.split(key)
        bound = 1.0 / math.sqrt(fan_in)
        w = jax.random.uniform(kw, (fan_in, fan_out), jnp.float32, -bound, bound)
        b = jax.random.uniform(kb, (1, fan_out), jnp.float32, -bound, bound)
        return w, b

    keys = jax.random.split(key, 6 + time_steps)
    D, T = input_dim, time_steps
    wi, bi = linear(keys[0], D, D)
    wt, bt = linear(keys[1], D, D)
    temporal = [linear(keys[2 + t], D, D) for t in range(T)]
    wtemp = jnp.stack([w for w, _ in temporal], axis=0)           # (T, D, D)
    btemp = jnp.concatenate([b for _, b in temporal], axis=0)     # (T, D)
    # gate: Linear(D*3*T, D) -> ReLU -> Linear(D, D) -> Sigmoid (T must be 1 at runtime)
    wg1, bg1 = linear(keys[2 + T], D * 3 * T, D)
    wg2, bg2 = linear(keys[3 + T], D, D)
    wo, bo = linear(keys[4 + T], D, D)
    return dict(wi=wi, bi=bi, wt=wt, bt=bt, wtemp=wtemp, btemp=btemp,
                wg1=wg1, bg1=bg1, wg2=wg2, bg2=bg2, wo=wo, bo=bo)


def feature_fusion_reference(intrinsic, transferred, temporal, p):
    T = temporal.shape[1]
    it = intrinsic @ p["wi"] + p["bi"]
    tt = transferred @ p["wt"] + p["bt"]
    steps = [temporal[:, t, :] @ p["wtemp"][t] + p["btemp"][t:t + 1, :]
             for t in range(T)]
    ft = jnp.stack(steps, axis=1).mean(axis=1)
    comb = jnp.concatenate([it, tt, ft], axis=-1)
    h = jax.nn.relu(comb @ p["wg1"][:comb.shape[-1], :] + p["bg1"])
    g = jax.nn.sigmoid(h @ p["wg2"] + p["bg2"])
    fused = g * it + (1.0 - g) * tt + ft
    return fused @ p["wo"] + p["bo"]


if __name__ == "__main__":
    N, D, T = 16, 32, 1          # num_new_nodes, input_dim, time_steps
    key = jax.random.PRNGKey(0)
    k_in, k_tr, k_tm, k_p = jax.random.split(key, 4)

    intrinsic = jax.random.normal(k_in, (N, D), jnp.float32)
    transferred = jax.random.normal(k_tr, (N, D), jnp.float32)
    temporal = jax.random.normal(k_tm, (N, T, D), jnp.float32)
    params = init_params(k_p, D, T)

    ref = feature_fusion_reference(intrinsic, transferred, temporal, params)

    # f32 compute path: bitwise-close to the reference.
    packed_f32 = pack_params(params, D, T, compute_dtype=jnp.float32)
    out_f32 = jax.block_until_ready(
        feature_fusion(intrinsic, transferred, temporal, packed_f32))
    assert out_f32.shape == (N, D)
    assert jnp.allclose(out_f32, ref, atol=2e-5, rtol=2e-5), "f32 path mismatch"

    # Default (bf16 operands, f32 accumulation) path: looser tolerance.
    packed_bf16 = pack_params(params, D, T)      # compute_dtype defaults to bf16
    out_bf16 = jax.block_until_ready(
        feature_fusion(intrinsic, transferred, temporal, packed_bf16))
    assert out_bf16.shape == (N, D)
    assert jnp.allclose(out_bf16, ref, atol=0.15, rtol=0.05), "bf16 path mismatch"

    print("KERNEL_OK")
</pallas_src>

<mosaic_0001>
module attributes {stable_mosaic.version = 11 : i64} {
  func.func @_feature_fusion_kernel(%arg0: i32, %arg1: memref<8x128xf32, #tpu.memory_space<vmem>>, %arg2: memref<8x128xf32, #tpu.memory_space<vmem>>, %arg3: memref<8x128xf32, #tpu.memory_space<vmem>>, %arg4: memref<128x128xf32, #tpu.memory_space<vmem>>, %arg5: memref<128x128xf32, #tpu.memory_space<vmem>>, %arg6: memref<128x128xf32, #tpu.memory_space<vmem>>, %arg7: memref<128x128xf32, #tpu.memory_space<vmem>>, %arg8: memref<128x128xf32, #tpu.memory_space<vmem>>, %arg9: memref<128x128xf32, #tpu.memory_space<vmem>>, %arg10: memref<128x128xf32, #tpu.memory_space<vmem>>, %arg11: memref<128x128xf32, #tpu.memory_space<vmem>>, %arg12: memref<8x128xf32, #tpu.memory_space<vmem>>, %arg13: memref<8x128xf32, #tpu.memory_space<vmem>>) attributes {dimension_semantics = [#tpu.dimension_semantics<parallel>], iteration_bounds = array<i64: 2>, scalar_prefetch = 0 : i64, scratch_operands = 0 : i64, tpu.core_type = #tpu.core_type<tc>, window_params = [{transform_indices = @transform_0, window_bounds = array<i64: 8, 128>}, {transform_indices = @transform_1, window_bounds = array<i64: 8, 128>}, {transform_indices = @transform_2, window_bounds = array<i64: 8, 128>}, {pipeline_mode = #tpu.pipeline_mode<synchronous>, transform_indices = @transform_3, window_bounds = array<i64: 128, 128>}, {pipeline_mode = #tpu.pipeline_mode<synchronous>, transform_indices = @transform_4, window_bounds = array<i64: 128, 128>}, {pipeline_mode = #tpu.pipeline_mode<synchronous>, transform_indices = @transform_5, window_bounds = array<i64: 128, 128>}, {pipeline_mode = #tpu.pipeline_mode<synchronous>, transform_indices = @transform_6, window_bounds = array<i64: 128, 128>}, {pipeline_mode = #tpu.pipeline_mode<synchronous>, transform_indices = @transform_7, window_bounds = array<i64: 128, 128>}, {pipeline_mode = #tpu.pipeline_mode<synchronous>, transform_indices = @transform_8, window_bounds = array<i64: 128, 128>}, {pipeline_mode = #tpu.pipeline_mode<synchronous>, transform_indices = @transform_9, window_bounds = array<i64: 128, 128>}, {pipeline_mode = #tpu.pipeline_mode<synchronous>, transform_indices = @transform_10, window_bounds = array<i64: 128, 128>}, {pipeline_mode = #tpu.pipeline_mode<synchronous>, transform_indices = @transform_11, window_bounds = array<i64: 8, 128>}, {transform_indices = @transform_12, window_bounds = array<i64: 8, 128>}]} {
    %c0 = arith.constant 0 : index
    %c0_0 = arith.constant 0 : index
    %0 = vector.load %arg1[%c0, %c0_0] : memref<8x128xf32, #tpu.memory_space<vmem>>, vector<8x128xf32>
    %c0_1 = arith.constant 0 : index
    %c0_2 = arith.constant 0 : index
    %1 = vector.load %arg4[%c0_1, %c0_2] : memref<128x128xf32, #tpu.memory_space<vmem>>, vector<128x128xf32>
    %cst = arith.constant dense<0.000000e+00> : vector<8x128xf32>
    %2 = tpu.matmul %0, %1, %cst {dimension_numbers = #tpu.dot_dimension_numbers<[1], [0], [0], [1], [0, 0, 1, 1], [], []>} : vector<8x128xf32>, vector<128x128xf32>, vector<8x128xf32> -> vector<8x128xf32>
    %c0_3 = arith.constant 0 : index
    %c0_4 = arith.constant 0 : index
    %3 = vector.load %arg12[%c0_3, %c0_4] : memref<8x128xf32, #tpu.memory_space<vmem>>, vector<1x128xf32>
    %4 = vector.broadcast %3 : vector<1x128xf32> to vector<8x128xf32>
    %5 = arith.addf %2, %4 : vector<8x128xf32>
    %c0_5 = arith.constant 0 : index
    %c0_6 = arith.constant 0 : index
    %6 = vector.load %arg2[%c0_5, %c0_6] : memref<8x128xf32, #tpu.memory_space<vmem>>, vector<8x128xf32>
    %c0_7 = arith.constant 0 : index
    %c0_8 = arith.constant 0 : index
    %7 = vector.load %arg5[%c0_7, %c0_8] : memref<128x128xf32, #tpu.memory_space<vmem>>, vector<128x128xf32>
    %cst_9 = arith.constant dense<0.000000e+00> : vector<8x128xf32>
    %8 = tpu.matmul %6, %7, %cst_9 {dimension_numbers = #tpu.dot_dimension_numbers<[1], [0], [0], [1], [0, 0, 1, 1], [], []>} : vector<8x128xf32>, vector<128x128xf32>, vector<8x128xf32> -> vector<8x128xf32>
    %c1 = arith.constant 1 : index
    %c0_10 = arith.constant 0 : index
    %9 = vector.load %arg12[%c1, %c0_10] : memref<8x128xf32, #tpu.memory_space<vmem>>, vector<1x128xf32>
    %10 = vector.broadcast %9 : vector<1x128xf32> to vector<8x128xf32>
    %11 = arith.addf %8, %10 : vector<8x128xf32>
    %c0_11 = arith.constant 0 : index
    %c0_12 = arith.constant 0 : index
    %12 = vector.load %arg3[%c0_11, %c0_12] : memref<8x128xf32, #tpu.memory_space<vmem>>, vector<8x128xf32>
    %c0_13 = arith.constant 0 : index
    %c0_14 = arith.constant 0 : index
    %13 = vector.load %arg6[%c0_13, %c0_14] : memref<128x128xf32, #tpu.memory_space<vmem>>, vector<128x128xf32>
    %cst_15 = arith.constant dense<0.000000e+00> : vector<8x128xf32>
    %14 = tpu.matmul %12, %13, %cst_15 {dimension_numbers = #tpu.dot_dimension_numbers<[1], [0], [0], [1], [0, 0, 1, 1], [], []>} : vector<8x128xf32>, vector<128x128xf32>, vector<8x128xf32> -> vector<8x128xf32>
    %c2 = arith.constant 2 : index
    %c0_16 = arith.constant 0 : index
    %15 = vector.load %arg12[%c2, %c0_16] : memref<8x128xf32, #tpu.memory_space<vmem>>, vector<1x128xf32>
    %16 = vector.broadcast %15 : vector<1x128xf32> to vector<8x128xf32>
    %17 = arith.addf %14, %16 : vector<8x128xf32>
    %c0_17 = arith.constant 0 : index
    %c0_18 = arith.constant 0 : index
    %18 = vector.load %arg7[%c0_17, %c0_18] : memref<128x128xf32, #tpu.memory_space<vmem>>, vector<128x128xf32>
    %cst_19 = arith.constant dense<0.000000e+00> : vector<8x128xf32>
    %19 = tpu.matmul %5, %18, %cst_19 {dimension_numbers = #tpu.dot_dimension_numbers<[1], [0], [0], [1], [0, 0, 1, 1], [], []>} : vector<8x128xf32>, vector<128x128xf32>, vector<8x128xf32> -> vector<8x128xf32>
    %c0_20 = arith.constant 0 : index
    %c0_21 = arith.constant 0 : index
    %20 = vector.load %arg8[%c0_20, %c0_21] : memref<128x128xf32, #tpu.memory_space<vmem>>, vector<128x128xf32>
    %cst_22 = arith.constant dense<0.000000e+00> : vector<8x128xf32>
    %21 = tpu.matmul %11, %20, %cst_22 {dimension_numbers = #tpu.dot_dimension_numbers<[1], [0], [0], [1], [0, 0, 1, 1], [], []>} : vector<8x128xf32>, vector<128x128xf32>, vector<8x128xf32> -> vector<8x128xf32>
    %22 = arith.addf %19, %21 : vector<8x128xf32>
    %c0_23 = arith.constant 0 : index
    %c0_24 = arith.constant 0 : index
    %23 = vector.load %arg9[%c0_23, %c0_24] : memref<128x128xf32, #tpu.memory_space<vmem>>, vector<128x128xf32>
    %cst_25 = arith.constant dense<0.000000e+00> : vector<8x128xf32>
    %24 = tpu.matmul %17, %23, %cst_25 {dimension_numbers = #tpu.dot_dimension_numbers<[1], [0], [0], [1], [0, 0, 1, 1], [], []>} : vector<8x128xf32>, vector<128x128xf32>, vector<8x128xf32> -> vector<8x128xf32>
    %25 = arith.addf %22, %24 : vector<8x128xf32>
    %c3 = arith.constant 3 : index
    %c0_26 = arith.constant 0 : index
    %26 = vector.load %arg12[%c3, %c0_26] : memref<8x128xf32, #tpu.memory_space<vmem>>, vector<1x128xf32>
    %27 = vector.broadcast %26 : vector<1x128xf32> to vector<8x128xf32>
    %28 = arith.addf %25, %27 : vector<8x128xf32>
    %cst_27 = arith.constant 0.000000e+00 : f32
    %29 = vector.broadcast %cst_27 : f32 to vector<8x128xf32>
    %30 = arith.maximumf %28, %29 : vector<8x128xf32>
    %c0_28 = arith.constant 0 : index
    %c0_29 = arith.constant 0 : index
    %31 = vector.load %arg10[%c0_28, %c0_29] : memref<128x128xf32, #tpu.memory_space<vmem>>, vector<128x128xf32>
    %cst_30 = arith.constant dense<0.000000e+00> : vector<8x128xf32>
    %32 = tpu.matmul %30, %31, %cst_30 {dimension_numbers = #tpu.dot_dimension_numbers<[1], [0], [0], [1], [0, 0, 1, 1], [], []>} : vector<8x128xf32>, vector<128x128xf32>, vector<8x128xf32> -> vector<8x128xf32>
    %c4 = arith.constant 4 : index
    %c0_31 = arith.constant 0 : index
    %33 = vector.load %arg12[%c4, %c0_31] : memref<8x128xf32, #tpu.memory_space<vmem>>, vector<1x128xf32>
    %34 = vector.broadcast %33 : vector<1x128xf32> to vector<8x128xf32>
    %35 = arith.addf %32, %34 : vector<8x128xf32>
    %36 = arith.negf %35 : vector<8x128xf32>
    %37 = math.exp %36 : vector<8x128xf32>
    %cst_32 = arith.constant 1.000000e+00 : f32
    %38 = vector.broadcast %cst_32 : f32 to vector<8x128xf32>
    %39 = arith.addf %38, %37 : vector<8x128xf32>
    %40 = arith.divf %38, %39 : vector<8x128xf32>
    %41 = arith.subf %5, %11 : vector<8x128xf32>
    %42 = arith.mulf %40, %41 : vector<8x128xf32>
    %43 = arith.addf %11, %42 : vector<8x128xf32>
    %44 = arith.addf %43, %17 : vector<8x128xf32>
    %c0_33 = arith.constant 0 : index
    %c0_34 = arith.constant 0 : index
    %45 = vector.load %arg11[%c0_33, %c0_34] : memref<128x128xf32, #tpu.memory_space<vmem>>, vector<128x128xf32>
    %cst_35 = arith.constant dense<0.000000e+00> : vector<8x128xf32>
    %46 = tpu.matmul %44, %45, %cst_35 {dimension_numbers = #tpu.dot_dimension_numbers<[1], [0], [0], [1], [0, 0, 1, 1], [], []>} : vector<8x128xf32>, vector<128x128xf32>, vector<8x128xf32> -> vector<8x128xf32>
    %c5 = arith.constant 5 : index
    %c0_36 = arith.constant 0 : index
    %47 = vector.load %arg12[%c5, %c0_36] : memref<8x128xf32, #tpu.memory_space<vmem>>, vector<1x128xf32>
    %48 = vector.broadcast %47 : vector<1x128xf32> to vector<8x128xf32>
    %49 = arith.addf %46, %48 : vector<8x128xf32>
    %c0_37 = arith.constant 0 : index
    %c0_38 = arith.constant 0 : index
    %50 = vector.load %arg13[%c0_37, %c0_38] : memref<8x128xf32, #tpu.memory_space<vmem>>, vector<8x128xf32>
    tpu.vector_store %arg13[%c0_37, %c0_38], %49 {strides = array<i32>} : memref<8x128xf32, #tpu.memory_space<vmem>>, vector<8x128xf32>,
    return
  }
  func.func @transform_0(%arg0: i32) -> (i32, i32) {
    %c0_i32 = arith.constant 0 : i32
    %c0_i32_0 = arith.constant 0 : i32
    return %arg0, %c0_i32 : i32, i32
  }
  func.func @transform_1(%arg0: i32) -> (i32, i32) {
    %c0_i32 = arith.constant 0 : i32
    %c0_i32_0 = arith.constant 0 : i32
    return %arg0, %c0_i32 : i32, i32
  }
  func.func @transform_2(%arg0: i32) -> (i32, i32) {
    %c0_i32 = arith.constant 0 : i32
    %c0_i32_0 = arith.constant 0 : i32
    return %arg0, %c0_i32 : i32, i32
  }
  func.func @transform_3(%arg0: i32) -> (i32, i32) {
    %c0_i32 = arith.constant 0 : i32
    %c0_i32_0 = arith.constant 0 : i32
    %c0_i32_1 = arith.constant 0 : i32
    return %c0_i32, %c0_i32_0 : i32, i32
  }
  func.func @transform_4(%arg0: i32) -> (i32, i32) {
    %c0_i32 = arith.constant 0 : i32
    %c0_i32_0 = arith.constant 0 : i32
    %c0_i32_1 = arith.constant 0 : i32
    return %c0_i32, %c0_i32_0 : i32, i32
  }
  func.func @transform_5(%arg0: i32) -> (i32, i32) {
    %c0_i32 = arith.constant 0 : i32
    %c0_i32_0 = arith.constant 0 : i32
    %c0_i32_1 = arith.constant 0 : i32
    return %c0_i32, %c0_i32_0 : i32, i32
  }
  func.func @transform_6(%arg0: i32) -> (i32, i32) {
    %c0_i32 = arith.constant 0 : i32
    %c0_i32_0 = arith.constant 0 : i32
    %c0_i32_1 = arith.constant 0 : i32
    return %c0_i32, %c0_i32_0 : i32, i32
  }
  func.func @transform_7(%arg0: i32) -> (i32, i32) {
    %c0_i32 = arith.constant 0 : i32
    %c0_i32_0 = arith.constant 0 : i32
    %c0_i32_1 = arith.constant 0 : i32
    return %c0_i32, %c0_i32_0 : i32, i32
  }
  func.func @transform_8(%arg0: i32) -> (i32, i32) {
    %c0_i32 = arith.constant 0 : i32
    %c0_i32_0 = arith.constant 0 : i32
    %c0_i32_1 = arith.constant 0 : i32
    return %c0_i32, %c0_i32_0 : i32, i32
  }
  func.func @transform_9(%arg0: i32) -> (i32, i32) {
    %c0_i32 = arith.constant 0 : i32
    %c0_i32_0 = arith.constant 0 : i32
    %c0_i32_1 = arith.constant 0 : i32
    return %c0_i32, %c0_i32_0 : i32, i32
  }
  func.func @transform_10(%arg0: i32) -> (i32, i32) {
    %c0_i32 = arith.constant 0 : i32
    %c0_i32_0 = arith.constant 0 : i32
    %c0_i32_1 = arith.constant 0 : i32
    return %c0_i32, %c0_i32_0 : i32, i32
  }
  func.func @transform_11(%arg0: i32) -> (i32, i32) {
    %c0_i32 = arith.constant 0 : i32
    %c0_i32_0 = arith.constant 0 : i32
    %c0_i32_1 = arith.constant 0 : i32
    return %c0_i32, %c0_i32_0 : i32, i32
  }
  func.func @transform_12(%arg0: i32) -> (i32, i32) {
    %c0_i32 = arith.constant 0 : i32
    %c0_i32_0 = arith.constant 0 : i32
    return %arg0, %c0_i32 : i32, i32
  }
}

</mosaic_0001>

<bundles_post_ra>
// kernel: tpu_custom_call.1
= control target key start
LH: loop header
LB: loop body
LE: loop exit
PB: predicated region body
PF: predicated region fallthrough
CT: control target
= control target key end

     0   :  { %s3407_s0 = inlined_call_operand.hbm [shape: f32[16,128], index: 0, kind: input, shape index: {}]   ;;  %s3408_s1 = inlined_call_operand.hbm [shape: f32[16,128], index: 1, kind: input, shape index: {}]   ;;  %s3409_s2 = inlined_call_operand.hbm [shape: f32[16,128], index: 2, kind: input, shape index: {}]   ;;  %s3410_s3 = inlined_call_operand.hbm [shape: f32[128,128], index: 3, kind: input, shape index: {}]   ;;  %s3411_s4 = inlined_call_operand.hbm [shape: f32[128,128], index: 4, kind: input, shape index: {}]   ;;  %s3412_s5 = inlined_call_operand.hbm [shape: f32[128,128], index: 5, kind: input, shape index: {}]   ;;  %s3413_s6 = inlined_call_operand.hbm [shape: f32[128,128], index: 6, kind: input, shape index: {}]   ;;  %s3414_s7 = inlined_call_operand.hbm [shape: f32[128,128], index: 7, kind: input, shape index: {}]   ;;  %s3415_s8 = inlined_call_operand.hbm [shape: f32[128,128], index: 8, kind: input, shape index: {}]   ;;  %s3416_s9 = inlined_call_operand.hbm [shape: f32[128,128], index: 9, kind: input, shape index: {}]   ;;  %s3417_s10 = inlined_call_operand.hbm [shape: f32[128,128], index: 10, kind: input, shape index: {}]   ;;  %s3418_s11 = inlined_call_operand.vmem [shape: f32[8,128], index: 11, kind: input, shape index: {}]   ;;  %s3419_s12 = inlined_call_operand.hbm [shape: f32[16,128], index: 12, kind: output, shape index: {}]  }
   0x1   :  { %3448 = sst [smem:[#allocation35_spill]] %s3408_s1 }
   0x2   :  { %3449 = sst [smem:[#allocation36_spill]] %s3409_s2 }
   0x3   :  { %3450 = sst [smem:[#allocation37_spill]] %s3410_s3 }
   0x4   :  { %3451 = sst [smem:[#allocation38_spill]] %s3412_s5 }
   0x5   :  { %3452 = sst [smem:[#allocation39_spill]] %s3414_s7 }
   0x6   :  { %3453 = sst [smem:[#allocation40_spill]] %s3416_s9 }
   0x7   :  { %3454 = sst [smem:[#allocation41_spill]] %s3418_s11 }
   0x8   :  { %3455 = sst [smem:[#allocation42_spill]] %s3419_s12 }
   0x9   :  { %17 = vsyncpa [#allocation3], 0 }
   0xa   :  { %19 = vsyncpa [#allocation3 + $0x1], 0 }
   0xb   :  { %20 = vsyncpa [#allocation6], 0 }
   0xc   :  { %22 = vsyncpa [#allocation6 + $0x1], 0 }
   0xd   :  { %23 = vsyncpa [#allocation9], 0 }
   0xe   :  { %24 = vsyncpa [#allocation12], 0 }
   0xf   :  { %25 = vsyncpa [#allocation15], 0 }
  0x10   :  { %26 = vsyncpa [#allocation18], 0 }
  0x11   :  { %27 = vsyncpa [#allocation4], 0 }
  0x12   :  { %29 = vsyncpa [#allocation4 + $0x1], 0  ;;  %s2833_s21 = smov 0   ;;  %s2835_s22 = smov 0  }
  0x13   :  { %s2837_s23 = smov 0   ;;  %s2839_s24 = smov 0  }
  0x14 LB: > { %3456 = sst [smem:[#allocation28_spill]] %s2737_s21  ;;  %s2751_s25 = smov [#allocation8]   ;;  %s2749_s24 = sphi %s2839_s24, %s3506_s24   ;;  %s2745_s23 = sphi %s2837_s23, %s3510_s23   ;;  %s2741_s22 = sphi %s2835_s22, %s3509_s22   ;;  %s2737_s21 = sphi %s2833_s21, %s3508_s21  }
  0x15   : > { %3457 = sst [smem:[#allocation29_spill]] %s2749_s24  ;;  %s345_s26 = sshll.u32 %s2751_s25, 4  ;;  %s2859_s26 = int_to_ptr.vmem [resolvable:$true] %s345_s26 }
  0x16   : > { %s2854_s27 = sadd.s32 4294967295, %s2749_s24   ;;  %p1555_p0 = scmp.ge.s32.totalorder %s2749_s24, 1 }
  0x17   : > { %p3424_p1 = scmp.eq.s32.totalorder %s2854_s27, 0  ;;  %p333_p2 = scmp.lt.s32.totalorder %s2749_s24, 3 }
  0x18   : > { %s2752_s29 = smov [#allocation11]   ;;  %s2753_s14 = smov [#allocation14]  }
  0x19   : > { %p2861_p3 = pnand %p1555_p0, %p333_p2  ;;  %s371_s30 = sshll.u32 %s2752_s29, 4  ;;  %s2874_s30 = int_to_ptr.vmem [resolvable:$true] %s371_s30 }
  0x1a   : > { %s397_s15 = sshll.u32 %s2753_s14, 4  ;;  %s3461_s3 = sld [smem:[#allocation37_spill]]  ;;  %s2876_s15 = int_to_ptr.vmem [resolvable:$true] %s397_s15 }
  0x1b   : > { %s3458_s28 = scalar_select %p2861_p3, 1, 0 }
  0x1c   : > { %p2243_p5 = pneg %p2861_p3 }
  0x1d   : > { %3459 = sst [smem:[#allocation30_spill]] %s3458_s28 }
  0x1e   : > { %p2870_p6 = pnand %p2243_p5, %p3424_p1 }
  0x20   : > { %s3460_s13 = scalar_select %p2870_p6, 1, 0 }
  0x21   : > { %s2349_s18 = scalar_lea.hbm %s3461_s3, 2048  ;;  %p2886_p8 = pneg %p2870_p6 }
  0x22   : > { %p2350_p7 = scmp.ne.s32.totalorder %s3461_s3, %s2349_s18  ;;  %p2356_p11 = scmp.lt.u32.totalorder %s2349_s18, %s3461_s3 }
  0x23   : > { %s3462_s25 = scalar_select %p2886_p8, 1, 0 }
  0x24   : > { %p2352_p9 = pnand %p2886_p8, %p2350_p7 }
  0x26   : > { %p2353_p10 = pneg %p2352_p9 }
  0x28   : > { %p2358_p12 = pnand %p2356_p11, %p2353_p10 }
  0x2a   : > { %2361 = shalt.err (!%p2358_p12)
}
  0x2b   : > { %s2362_s16 = scalar_lea.vmem %s2859_s26, 2048  ;;  %p2370_p5 = scmp.lt.s32.totalorder %s2859_s26, %s2859_s26 }
  0x2c   : > { %p2363_p13 = scmp.ne.s32.totalorder %s2859_s26, %s2362_s16  ;;  %p2371_p4 = scmp.lt.s32.totalorder %s2362_s16, %s2362_s16 }
  0x2e   : > { %p2365_p0 = pnand %p2363_p13, %p2886_p8  ;;  %p2372_p7 = por %p2371_p4, %p2370_p5 }
  0x30   : > { %p2366_p2 = pneg %p2365_p0 }
  0x32   : > { %p2373_p9 = pnand %p2372_p7, %p2366_p2 }
  0x34   : > { %2376 = shalt.err (!%p2373_p9)
}
  0x35   : > { %s3426_s17 = smov 128   ;;  %s3429_s18 = smov 8  }
  0x36   : > { %2246 = dma.hbm_to_vmem [thread:$0]  (!%p2870_p6), %s3461_s3, 2048, %s2859_s26, [#allocation9], %s3426_s17, %s3426_s17, %s3429_s18  }
  0x37   : > { %s3463_s5 = sld [smem:[#allocation38_spill]] }
  0x3d   : > { %s2377_s16 = scalar_lea.hbm %s3463_s5, 2048 }
  0x3e   : > { %p2378_p4 = scmp.ne.s32.totalorder %s3463_s5, %s2377_s16  ;;  %p2384_p12 = scmp.lt.u32.totalorder %s2377_s16, %s3463_s5 }
  0x40   : > { %p2380_p10 = pnand %p2378_p4, %p2886_p8 }
  0x42   : > { %p2381_p11 = pneg %p2380_p10 }
  0x44   : > { %p2386_p13 = pnand %p2384_p12, %p2381_p11 }
  0x46   : > { %2389 = shalt.err (!%p2386_p13)
}
  0x47   : > { %s2390_s26 = scalar_lea.vmem %s2874_s30, 2048  ;;  %p2398_p7 = scmp.lt.s32.totalorder %s2874_s30, %s2874_s30 }
  0x48   : > { %p2391_p0 = scmp.ne.s32.totalorder %s2874_s30, %s2390_s26  ;;  %p2399_p9 = scmp.lt.s32.totalorder %s2390_s26, %s2390_s26 }
  0x4a   : > { %p2393_p2 = pnand %p2391_p0, %p2886_p8  ;;  %p2400_p4 = por %p2399_p9, %p2398_p7 }
  0x4c   : > { %p2394_p5 = pneg %p2393_p2 }
  0x4e   : > { %p2401_p10 = pnand %p2400_p4, %p2394_p5 }
  0x50   : > { %2404 = shalt.err (!%p2401_p10)
}
  0x51   : > { %2252 = dma.hbm_to_vmem [thread:$0]  (!%p2870_p6), %s3463_s5, 2048, %s2874_s30, [#allocation12], %s3426_s17, %s3426_s17, %s3429_s18  }
  0x52   : > { %s3464_s7 = sld [smem:[#allocation39_spill]] }
  0x58   : > { %s2405_s19 = scalar_lea.hbm %s3464_s7, 2048 }
  0x59   : > { %p2406_p11 = scmp.ne.s32.totalorder %s3464_s7, %s2405_s19  ;;  %p2412_p0 = scmp.lt.u32.totalorder %s2405_s19, %s3464_s7 }
  0x5b   : > { %p2408_p12 = pnand %p2406_p11, %p2886_p8 }
  0x5d   : > { %p2409_p13 = pneg %p2408_p12 }
  0x5f   : > { %p2414_p2 = pnand %p2412_p0, %p2409_p13 }
  0x61   : > { %2417 = shalt.err (!%p2414_p2)
}
  0x62   : > { %s2418_s30 = scalar_lea.vmem %s2876_s15, 2048  ;;  %p2426_p4 = scmp.lt.s32.totalorder %s2876_s15, %s2876_s15 }
  0x63   : > { %p2419_p5 = scmp.ne.s32.totalorder %s2876_s15, %s2418_s30  ;;  %p2427_p10 = scmp.lt.s32.totalorder %s2418_s30, %s2418_s30 }
  0x65   : > { %p2421_p7 = pnand %p2419_p5, %p2886_p8  ;;  %p2428_p11 = por %p2427_p10, %p2426_p4 }
  0x67   : > { %p2422_p9 = pneg %p2421_p7 }
  0x69   : > { %p2429_p12 = pnand %p2428_p11, %p2422_p9 }
  0x6b   : > { %2432 = shalt.err (!%p2429_p12)
}
  0x6c   : > { %2258 = dma.hbm_to_vmem [thread:$0]  (!%p2870_p6), %s3464_s7, 2048, %s2876_s15, [#allocation15], %s3426_s17, %s3426_s17, %s3429_s18  }
  0x6d   : > { %s2756_s11 = smov [#allocation17]   ;;  %s3465_s9 = sld [smem:[#allocation40_spill]] }
  0x6e   : > { %s423_s12 = sshll.u32 %s2756_s11, 4  ;;  %s424_s12 = int_to_ptr.vmem [resolvable:$true] %s423_s12 }
  0x73   : > { %s2433_s20 = scalar_lea.hbm %s3465_s9, 2048 }
  0x74   : > { %p2434_p13 = scmp.ne.s32.totalorder %s3465_s9, %s2433_s20  ;;  %p2440_p5 = scmp.lt.u32.totalorder %s2433_s20, %s3465_s9 }
  0x76   : > { %p2436_p0 = pnand %p2434_p13, %p2886_p8 }
  0x78   : > { %p2437_p2 = pneg %p2436_p0 }
  0x7a   : > { %p2442_p7 = pnand %p2440_p5, %p2437_p2 }
  0x7c   : > { %2445 = shalt.err (!%p2442_p7)
}
  0x7d   : > { %s2446_s15 = scalar_lea.vmem %s424_s12, 2048  ;;  %p2454_p11 = scmp.lt.s32.totalorder %s424_s12, %s424_s12 }
  0x7e   : > { %p2447_p9 = scmp.ne.s32.totalorder %s424_s12, %s2446_s15  ;;  %p2455_p12 = scmp.lt.s32.totalorder %s2446_s15, %s2446_s15 }
  0x80   : > { %p2449_p4 = pnand %p2447_p9, %p2886_p8  ;;  %p2456_p1 = por %p2455_p12, %p2454_p11 }
  0x82   : > { %p2450_p10 = pneg %p2449_p4 }
  0x84   : > { %p2457_p3 = pnand %p2456_p1, %p2450_p10 }
  0x86   : > { %2460 = shalt.err (!%p2457_p3)
}
  0x87   : > { %2264 = dma.hbm_to_vmem [thread:$0]  (!%p2870_p6), %s3465_s9, 2048, %s424_s12, [#allocation18], %s3426_s17, %s3426_s17, %s3429_s18  }
  0x88   : > { %s1554_s11 = sadd.s32 4294967294, %s2749_s24   ;;  %s2985_s28 = sadd.s32 1, %s2749_s24  }
  0x89   : > { %3466 = sst [smem:[#allocation31_spill]] %s2985_s28  ;;  %s39_s19 = ssub.s32 %s2749_s24, %s2985_s28 }
  0x8a   : > { %s42_s20 = sadd.s32 1, %s2745_s23  ;;  %p40_p1 = scmp.eq.s32.totalorder %s39_s19, 0 }
  0x8b   : > { %p49_p3 = scmp.ne.s32.totalorder %s2745_s23, %s2741_s22  ;;  %p50_p13 = scmp.eq.s32.totalorder %s2749_s24, 0 }
  0x8c   : > { %p55_p0 = scmp.ne.s32.totalorder %s2741_s22, %s2737_s21  ;;  %p3468_p5 = scmp.eq.s32.totalorder %s2854_s27, 0 }
  0x8d   : > { %s2996_s29 = scalar_select %p40_p1, %s2745_s23, %s42_s20  }
  0x8e   : > { %p51_p2 = por %p50_p13, %p49_p3  ;;  %p3000_p7 = por %p3468_p5, %p55_p0 }
  0x8f   : > { %3467 = sst [smem:[#allocation32_spill]] %s2996_s29  ;;  %p320_p9 = scmp.eq.s32.totalorder %s2854_s27, 1 }
  0x90   : > { %s3469_s14 = scalar_select %p3000_p7, 1, 0 }
  0x91   : > { %p326_p4 = scmp.eq.s32.totalorder %s1554_s11, 1  ;;  %p2290_p10 = scmp.lt.s32.totalorder %s2749_s24, 2 }
  0x92   : > { %s3428_s12 = sand.u32 1, %s2745_s23   ;;  %p3007_p11 = por %p320_p9, %p49_p3 }
  0x93   : > { %p3011_p12 = por %p326_p4, %p55_p0  ;;  %s3017_s15 = sshll.u32 %s3428_s12, 3 }
  0x94   : > { %s3470_s16 = scalar_select %p3007_p11, 1, 0 }
  0x95   : > { %s3472_s30 = scalar_select %p3011_p12, 1, 0 }
  0x96   : > { %3471 = sst [smem:[#allocation33_spill]] %s3470_s16  ;;  %s3020_s26 = sshll.u32 %s2749_s24, 7 }
  0x97   : > { %3473 = sst [smem:[#allocation34_spill]] %s3472_s30  ;;  %p3022_p1 = pnand %p2290_p10, %p51_p2 }
  0x98   : > { %s471_s11 = sand.u32 1, %s2749_s24   ;;  %s3475_s1 = sld [smem:[#allocation35_spill]] }
  0x99   : > { %s3474_s2 = scalar_select %p3022_p1, 1, 0 }
  0x9a   : > { %s475_s12 = scalar_lea.vmem [#allocation5], %s3017_s15  ;;  %s2757_s3 = smov [#allocation10]  }
  0x9b   : > { %s482_s18 = sshll.u32 %s475_s12, 4  ;;  %s3036_s5 = sshll.u32 %s2757_s3, 4  ;;  %s3034_s18 = int_to_ptr.vmem [resolvable:$true] %s482_s18  ;;  %s359_s5 = int_to_ptr.vmem [resolvable:$true] %s3036_s5 }
  0x9c   : > { %s3038_s7 = scalar_lea.sflag [#allocation6], %s471_s11  ;;  %p3044_p13 = pneg %p3022_p1 }
  0x9e   : > { %s3031_s17 = scalar_lea.hbm %s3475_s1, %s3020_s26  ;;  %s2466_s29 = scalar_lea.hbm %s3475_s1, 256 }
  0x9f   : > { %s2461_s9 = scalar_lea.hbm %s3031_s17, 128  ;;  %p2467_p5 = scmp.lt.u32.totalorder %s3031_s17, %s3475_s1 }
  0xa0   : > { %p2462_p3 = scmp.ne.s32.totalorder %s3031_s17, %s2461_s9  ;;  %p2468_p9 = scmp.lt.u32.totalorder %s2466_s29, %s2461_s9 }
  0xa1   : > { %s3476_s19 = scalar_select %p3044_p13, 1, 0 }
  0xa2   : > { %p2464_p0 = pnand %p3044_p13, %p2462_p3  ;;  %p2469_p4 = por %p2468_p9, %p2467_p5 }
  0xa3   : > { %p2470_p10 = scmp.lt.u32.totalorder %s2461_s9, %s3031_s17 }
  0xa4   : > { %p2465_p2 = pneg %p2464_p0 }
  0xa5   : > { %p2471_p12 = por %p2470_p10, %p2469_p4 }
  0xa7   : > { %p2472_p11 = pnand %p2471_p12, %p2465_p2 }
  0xa9   : > { %2475 = shalt.err (!%p2472_p11)
}
  0xaa   : > { %s2476_s11 = scalar_lea.vmem %s3034_s18, 128  ;;  %s2758_s20 = smov [#allocation5]  }
  0xab   : > { %p2477_p3 = scmp.ne.s32.totalorder %s3034_s18, %s2476_s11  ;;  %s2481_s12 = sshll.u32 %s2758_s20, 4  ;;  %s2482_s12 = int_to_ptr.vmem [resolvable:$false] %s2481_s12 }
  0xac   : > { %s2483_s28 = scalar_lea.vmem %s2482_s12, 256  ;;  %p2484_p6 = scmp.lt.s32.totalorder %s3034_s18, %s2482_s12 }
  0xad   : > { %p2479_p0 = pnand %p2477_p3, %p3044_p13  ;;  %p2485_p8 = scmp.lt.s32.totalorder %s2483_s28, %s2476_s11 }
  0xaf   : > { %p2480_p7 = pneg %p2479_p0  ;;  %p2486_p5 = por %p2485_p8, %p2484_p6 }
  0xb1   : > { %p2487_p9 = pnand %p2486_p5, %p2480_p7 }
  0xb3   : > { %2490 = shalt.err (!%p2487_p9)
}
  0xb4   : > { %2274 = dma.hbm_to_vmem [thread:$0]  (!%p3022_p1), %s3031_s17, 128, %s3034_s18, %s3038_s7  }
  0xb5   : > { %s2491_s3 = scalar_lea.hbm %s3411_s4, 2048  ;;  %p3477_p6 = scmp.ne.s32.totalorder %s3462_s25, 0 }
  0xb6   : > { %p2492_p11 = scmp.ne.s32.totalorder %s3411_s4, %s2491_s3  ;;  %p2498_p12 = scmp.lt.u32.totalorder %s2491_s3, %s3411_s4 }
  0xb8   : > { %p2494_p8 = pnand %p2492_p11, %p3477_p6 }
  0xba   : > { %p2495_p7 = pneg %p2494_p8 }
  0xbc   : > { %p2500_p2 = pnand %p2498_p12, %p2495_p7 }
  0xbe   : > { %2503 = shalt.err (!%p2500_p2)
}
  0xbf   : > { %s2504_s28 = scalar_lea.vmem %s359_s5, 2048  ;;  %p2512_p0 = scmp.lt.s32.totalorder %s359_s5, %s359_s5 }
  0xc0   : > { %p2505_p4 = scmp.ne.s32.totalorder %s359_s5, %s2504_s28  ;;  %p2513_p5 = scmp.lt.s32.totalorder %s2504_s28, %s2504_s28 }
  0xc2   : > { %p2507_p10 = pnand %p2505_p4, %p3477_p6  ;;  %p2514_p9 = por %p2513_p5, %p2512_p0 }
  0xc4   : > { %p2508_p3 = pneg %p2507_p10 }
  0xc6   : > { %p2515_p1 = pnand %p2514_p9, %p2508_p3 }
  0xc8   : > { %2518 = shalt.err (!%p2515_p1)
}
  0xc9   : > { %p3478_p11 = scmp.ne.s32.totalorder %s3460_s13, 0  ;;  %s3479_s1 = smov 8  }
  0xca   : > { %s3480_s17 = smov 128   ;;  %s2759_s29 = smov [#allocation13]  }
  0xcb   : > { %2249 = dma.hbm_to_vmem [thread:$0]  (!%p3478_p11), %s3411_s4, 2048, %s359_s5, [#allocation9], %s3480_s17, %s3480_s17, %s3479_s1  }
  0xcc   : > { %s384_s3 = sshll.u32 %s2759_s29, 4  ;;  %s2760_s20 = smov [#allocation16]   ;;  %s385_s3 = int_to_ptr.vmem [resolvable:$true] %s384_s3 }
  0xcd   : > { %s410_s11 = sshll.u32 %s2760_s20, 4  ;;  %s2519_s24 = scalar_lea.hbm %s3413_s6, 2048  ;;  %s411_s11 = int_to_ptr.vmem [resolvable:$true] %s410_s11 }
  0xce   : > { %p2520_p1 = scmp.ne.s32.totalorder %s3413_s6, %s2519_s24  ;;  %p2526_p12 = scmp.lt.u32.totalorder %s2519_s24, %s3413_s6 }
  0xd0   : > { %p2522_p8 = pnand %p2520_p1, %p3477_p6 }
  0xd2   : > { %p2523_p7 = pneg %p2522_p8 }
  0xd4   : > { %p2528_p2 = pnand %p2526_p12, %p2523_p7 }
  0xd6   : > { %2531 = shalt.err (!%p2528_p2)
}
  0xd7   : > { %s2532_s5 = scalar_lea.vmem %s385_s3, 2048  ;;  %p2540_p0 = scmp.lt.s32.totalorder %s385_s3, %s385_s3 }
  0xd8   : > { %p2533_p4 = scmp.ne.s32.totalorder %s385_s3, %s2532_s5  ;;  %p2541_p5 = scmp.lt.s32.totalorder %s2532_s5, %s2532_s5 }
  0xda   : > { %p2535_p10 = pnand %p2533_p4, %p3477_p6  ;;  %p2542_p9 = por %p2541_p5, %p2540_p0 }
  0xdc   : > { %p2536_p3 = pneg %p2535_p10 }
  0xde   : > { %p2543_p13 = pnand %p2542_p9, %p2536_p3 }
  0xe0   : > { %2546 = shalt.err (!%p2543_p13)
}
  0xe1   : > { %2255 = dma.hbm_to_vmem [thread:$0]  (!%p3478_p11), %s3413_s6, 2048, %s385_s3, [#allocation12], %s3480_s17, %s3480_s17, %s3479_s1  }
  0xe2   : > { %s2547_s9 = scalar_lea.hbm %s3415_s8, 2048 }
  0xe3   : > { %p2548_p1 = scmp.ne.s32.totalorder %s3415_s8, %s2547_s9  ;;  %p2554_p7 = scmp.lt.u32.totalorder %s2547_s9, %s3415_s8 }
  0xe5   : > { %p2550_p13 = pnand %p2548_p1, %p3477_p6 }
  0xe7   : > { %p2551_p8 = pneg %p2550_p13 }
  0xe9   : > { %p2556_p12 = pnand %p2554_p7, %p2551_p8 }
  0xeb   : > { %2559 = shalt.err (!%p2556_p12)
}
  0xec   : > { %s2560_s18 = scalar_lea.vmem %s411_s11, 2048  ;;  %p2568_p3 = scmp.lt.s32.totalorder %s411_s11, %s411_s11 }
  0xed   : > { %p2561_p2 = scmp.ne.s32.totalorder %s411_s11, %s2560_s18  ;;  %p2569_p0 = scmp.lt.s32.totalorder %s2560_s18, %s2560_s18 }
  0xef   : > { %p2563_p4 = pnand %p2561_p2, %p3477_p6  ;;  %p2570_p5 = por %p2569_p0, %p2568_p3 }
  0xf1   : > { %p2564_p10 = pneg %p2563_p4 }
  0xf3   : > { %p2571_p9 = pnand %p2570_p5, %p2564_p10 }
  0xf5   : > { %2574 = shalt.err (!%p2571_p9)
}
  0xf6   : > { %2261 = dma.hbm_to_vmem [thread:$0]  (!%p3478_p11), %s3415_s8, 2048, %s411_s11, [#allocation15], %s3480_s17, %s3480_s17, %s3479_s1  }
  0xf7   : > { %s2761_s21 = smov [#allocation19]   ;;  %s2575_s9 = scalar_lea.hbm %s3417_s10, 2048 }
  0xf8   : > { %s436_s24 = sshll.u32 %s2761_s21, 4  ;;  %p2576_p1 = scmp.ne.s32.totalorder %s3417_s10, %s2575_s9  ;;  %s437_s24 = int_to_ptr.vmem [resolvable:$true] %s436_s24 }
  0xf9   : > { %p2582_p7 = scmp.lt.u32.totalorder %s2575_s9, %s3417_s10 }
  0xfa   : > { %p2578_p13 = pnand %p2576_p1, %p3477_p6 }
  0xfc   : > { %p2579_p8 = pneg %p2578_p13 }
  0xfe   : > { %p2584_p12 = pnand %p2582_p7, %p2579_p8 }
 0x100   : > { %2587 = shalt.err (!%p2584_p12)
}
 0x101   : > { %s2588_s11 = scalar_lea.vmem %s437_s24, 2048  ;;  %p2596_p3 = scmp.lt.s32.totalorder %s437_s24, %s437_s24 }
 0x102   : > { %p2589_p2 = scmp.ne.s32.totalorder %s437_s24, %s2588_s11  ;;  %p2597_p0 = scmp.lt.s32.totalorder %s2588_s11, %s2588_s11 }
 0x104   : > { %p2591_p4 = pnand %p2589_p2, %p3477_p6  ;;  %p2598_p5 = por %p2597_p0, %p2596_p3 }
 0x106   : > { %p2592_p10 = pneg %p2591_p4 }
 0x108   : > { %p2599_p9 = pnand %p2598_p5, %p2592_p10 }
 0x10a   : > { %2602 = shalt.err (!%p2599_p9)
}
 0x10b   : > { %2267 = dma.hbm_to_vmem [thread:$0]  (!%p3478_p11), %s3417_s10, 2048, %s437_s24, [#allocation18], %s3480_s17, %s3480_s17, %s3479_s1  }
 0x10c   : > { %s3157_s21 = scalar_lea.hbm %s3407_s0, %s3020_s26  ;;  %s457_s13 = scalar_lea.vmem [#allocation2], %s3017_s15 }
 0x10d   : > { %s464_s16 = sshll.u32 %s457_s13, 4  ;;  %s3481_s30 = sand.u32 1, %s2745_s23   ;;  %s465_s16 = int_to_ptr.vmem [resolvable:$true] %s464_s16 }
 0x10e   : > { %s454_s9 = scalar_lea.sflag [#allocation3], %s3481_s30  ;;  %s2603_s29 = scalar_lea.hbm %s3157_s21, 128 }
 0x10f   : > { %p2604_p6 = scmp.ne.s32.totalorder %s3157_s21, %s2603_s29  ;;  %p3482_p1 = scmp.ne.s32.totalorder %s3476_s19, 0 }
 0x110   : > { %s2608_s24 = scalar_lea.hbm %s3407_s0, 256  ;;  %p2609_p11 = scmp.lt.u32.totalorder %s3157_s21, %s3407_s0 }
 0x111   : > { %p2606_p13 = pnand %p2604_p6, %p3482_p1  ;;  %p2610_p7 = scmp.lt.u32.totalorder %s2608_s24, %s2603_s29 }
 0x112   : > { %p2612_p2 = scmp.lt.u32.totalorder %s2603_s29, %s3157_s21 }
 0x113   : > { %p2607_p8 = pneg %p2606_p13  ;;  %p2611_p12 = por %p2610_p7, %p2609_p11 }
 0x115   : > { %p2613_p4 = por %p2612_p2, %p2611_p12 }
 0x117   : > { %p2614_p10 = pnand %p2613_p4, %p2607_p8 }
 0x119   : > { %2617 = shalt.err (!%p2614_p10)
}
 0x11a   : > { %s2618_s28 = scalar_lea.vmem %s465_s16, 128  ;;  %s2762_s11 = smov [#allocation2]  }
 0x11b   : > { %p2619_p3 = scmp.ne.s32.totalorder %s465_s16, %s2618_s28  ;;  %s2623_s18 = sshll.u32 %s2762_s11, 4  ;;  %s2624_s18 = int_to_ptr.vmem [resolvable:$false] %s2623_s18 }
 0x11c   : > { %s2625_s3 = scalar_lea.vmem %s2624_s18, 256  ;;  %p2626_p9 = scmp.lt.s32.totalorder %s465_s16, %s2624_s18 }
 0x11d   : > { %p2621_p0 = pnand %p2619_p3, %p3482_p1  ;;  %p2627_p6 = scmp.lt.s32.totalorder %s2625_s3, %s2618_s28 }
 0x11f   : > { %p2622_p5 = pneg %p2621_p0  ;;  %p2628_p13 = por %p2627_p6, %p2626_p9 }
 0x121   : > { %p2629_p7 = pnand %p2628_p13, %p2622_p5 }
 0x123   : > { %2632 = shalt.err (!%p2629_p7)
}
 0x124   : > { %p3483_p11 = scmp.ne.s32.totalorder %s3474_s2, 0  ;;  %s3484_s13 = sld [smem:[#allocation36_spill]] }
 0x125   : > { %s493_s29 = scalar_lea.vmem [#allocation7], %s3017_s15 }
 0x126   : > { %2271 = dma.hbm_to_vmem [thread:$0]  (!%p3483_p11), %s3157_s21, 128, %s465_s16, %s454_s9  }
 0x127   : > { %s500_s1 = sshll.u32 %s493_s29, 4  ;;  %s501_s1 = int_to_ptr.vmem [resolvable:$true] %s500_s1 }
 0x12a   : > { %s3183_s30 = scalar_lea.hbm %s3484_s13, %s3020_s26  ;;  %s2638_s21 = scalar_lea.hbm %s3484_s13, 256 }
 0x12b   : > { %s2633_s17 = scalar_lea.hbm %s3183_s30, 128  ;;  %p2639_p4 = scmp.lt.u32.totalorder %s3183_s30, %s3484_s13 }
 0x12c   : > { %p2634_p8 = scmp.ne.s32.totalorder %s3183_s30, %s2633_s17  ;;  %p2640_p10 = scmp.lt.u32.totalorder %s2638_s21, %s2633_s17 }
 0x12d   : > { %p2642_p0 = scmp.lt.u32.totalorder %s2633_s17, %s3183_s30 }
 0x12e   : > { %p2636_p12 = pnand %p2634_p8, %p3482_p1  ;;  %p2641_p3 = por %p2640_p10, %p2639_p4 }
 0x130   : > { %p2637_p2 = pneg %p2636_p12  ;;  %p2643_p5 = por %p2642_p0, %p2641_p3 }
 0x132   : > { %p2644_p9 = pnand %p2643_p5, %p2637_p2 }
 0x134   : > { %2647 = shalt.err (!%p2644_p9)
}
 0x135   : > { %s2648_s15 = scalar_lea.vmem %s501_s1, 128  ;;  %s2763_s26 = smov [#allocation7]  }
 0x136   : > { %p2649_p6 = scmp.ne.s32.totalorder %s501_s1, %s2648_s15  ;;  %s2653_s12 = sshll.u32 %s2763_s26, 4  ;;  %s2654_s12 = int_to_ptr.vmem [resolvable:$false] %s2653_s12 }
 0x137   : > { %s2655_s28 = scalar_lea.vmem %s2654_s12, 256  ;;  %p2656_p8 = scmp.lt.s32.totalorder %s501_s1, %s2654_s12 }
 0x138   : > { %p2651_p13 = pnand %p2649_p6, %p3482_p1  ;;  %p2657_p12 = scmp.lt.s32.totalorder %s2655_s28, %s2648_s15 }
 0x13a   : > { %p2652_p7 = pneg %p2651_p13  ;;  %p2658_p11 = por %p2657_p12, %p2656_p8 }
 0x13c   : > { %p2659_p4 = pnand %p2658_p11, %p2652_p7 }
 0x13e   : > { %2662 = shalt.err (!%p2659_p4)
}
 0x13f   : > { %p3485_p10 = scmp.ne.s32.totalorder %s3474_s2, 0  ;;  %s3486_s11 = sld [smem:[#allocation30_spill]] }
 0x141   : > { %2277 = dma.hbm_to_vmem [thread:$0]  (!%p3485_p10), %s3183_s30, 128, %s501_s1, %s3038_s7  }
 0x145   : > { %p3487_p2 = scmp.ne.s32.totalorder %s3486_s11, 0 }
 0x146   : > { %s3207_s19 = sand.u32 (!%p3487_p2), 1, %s2741_s22   ;;  %p3488_p1 = scmp.ne.s32.totalorder (!%p3487_p2), %s3469_s14, 0 }
 0x147   : > { %509 = sbr.rel (%p3487_p2) target bundleno = 1324 (0x52c), region = 68  ;;  %s3210_s18 = sshll.u32 (!%p3487_p2), %s3207_s19, 3 }
 0x148   : > { %s512_s3 = scalar_lea.sflag (!%p3487_p2), [#allocation3], %s3207_s19  ;;  %s515_s25 = scalar_lea.vmem (!%p3487_p2), [#allocation2], %s3210_s18 }
 0x14e   : > { %2708 = dma.done.wait (%p3488_p1), %s512_s3, 128  }
 0x14f   : > { %2710 = vsyncadd (%p3488_p1), %s512_s3, 4294967168  ;;  %s520_s7 = sand.u32 1, %s2854_s27   ;;  %s524_s5 = scalar_lea.vmem [#allocation5], %s3210_s18 }
 0x150   : > { %s521_s2 = scalar_lea.sflag [#allocation6], %s520_s7 }
 0x151   : > { %2712 = dma.done.wait (%p3488_p1), %s521_s2, 256  }
 0x152   : > { %2714 = vsyncadd (%p3488_p1), %s521_s2, 4294967040  ;;  %s533_s30 = scalar_lea.vmem [#allocation7], %s3210_s18  ;;  %p3489_p11 = scmp.eq.s32.totalorder %s2854_s27, 0 }
 0x154   : > { %2716 = dma.done.wait (%p3489_p11), [#allocation9], 4096   ;;  %p3490_p3 = pmov %p3489_p11 }
 0x156   : > { %2718 = vsyncadd (%p3490_p3), [#allocation9], 4294963200  ;;  %p3491_p0 = pmov %p3490_p3 }
 0x158   : > { %2720 = dma.done.wait (%p3491_p0), [#allocation12], 4096   ;;  %p3492_p5 = pmov %p3491_p0 }
 0x159   : > { %p3493_p9 = pmov %p3491_p0 }
 0x15a   : > { %2722 = vsyncadd (%p3492_p5), [#allocation12], 4294963200 }
 0x15b   : > { %2724 = dma.done.wait (%p3493_p9), [#allocation15], 4096   ;;  %p3494_p6 = pmov %p3491_p0 }
 0x15c   : > { %p3495_p13 = pmov %p3491_p0 }
 0x15d   : > { %2726 = vsyncadd (%p3494_p6), [#allocation15], 4294963200 }
 0x15e   : > { %2728 = dma.done.wait (%p3495_p13), [#allocation18], 4096   ;;  %p3496_p7 = pmov %p3491_p0 }
 0x15f   : > { %v2764_v0 = vmov 0.0|0.0   ;;  %vm2765_vm0 = vmmov 0   ;;  %v2766_v1 = vmov 0.0   ;;  %v617_v2 = vld [vmem:[#allocation8] sm:$0xff]  ;;  %v618_v3 = vld [vmem:[#allocation8 + $0x8] sm:$0xff]  ;;  %v619_v7 = vld [vmem:[#allocation8 + $0x10] sm:$0xff] }
 0x160   : > { %2730 = vsyncadd (%p3496_p7), [#allocation18], 4294963200  ;;  %2011 = vmatprep.subr.bf16.mxu0 %v2764_v0  ;;  %2035 = vmatprep.subr.bf16.mxu1 %v2764_v0  ;;  %v709_v4 = vld [vmem:[#allocation10] sm:$0xff]  ;;  %v2012_v5 = vpack.c.bf16 %v618_v3, %v617_v2  ;;  %v710_v6 = vld [vmem:[#allocation10 + $0x8] sm:$0xff]  ;;  %s3497_s1 = sld [smem:[#allocation41_spill]]  ;;  %s3498_s12 = sld [smem:[#allocation33_spill]] }
 0x161   : > { %1763 = vmatprep.mubr.msk.f32.mxu0 %vm2765_vm0, %v2766_v1  ;;  %1798 = vmatprep.mubr.msk.f32.mxu1 %vm2765_vm0, %v2766_v1  ;;  %v620_v8 = vld [vmem:[#allocation8 + $0x18] sm:$0xff]  ;;  %v2036_v9 = vpack.c.bf16 %v710_v6, %v709_v4  ;;  %v711_v10 = vld [vmem:[#allocation10 + $0x10] sm:$0xff]  ;;  %v621_v14 = vld [vmem:[#allocation8 + $0x20] sm:$0xff]  ;;  %s1592_s3 = sshll.u32 %s2854_s27, 7  ;;  %s1352_s29 = scalar_lea.sflag [#allocation4], %s3207_s19 }
 0x162   : > { %v712_v11 = vld [vmem:[#allocation10 + $0x18] sm:$0xff]  ;;  %2013 = vmatpush3.bf16.msra.mxu0 %v2012_v5  ;;  %v2015_v12 = vpack.c.bf16 %v620_v8, %v619_v7  ;;  %v622_v15 = vld [vmem:[#allocation8 + $0x28] sm:$0xff]  ;;  %v713_v16 = vld [vmem:[#allocation10 + $0x20] sm:$0xff]  ;;  %s2767_s27 = smov [#allocation20]  }
 0x163   : > { %2037 = vmatpush3.bf16.msra.mxu1 %v2036_v9  ;;  %2014 = vmatprep.subr.bf16.mxu0 %v2764_v0  ;;  %v2039_v13 = vpack.c.bf16 %v712_v11, %v711_v10  ;;  %v714_v17 = vld [vmem:[#allocation10 + $0x28] sm:$0xff]  ;;  %v2018_v18 = vpack.c.bf16 %v622_v15, %v621_v14  ;;  %v623_v20 = vld [vmem:[#allocation8 + $0x30] sm:$0xff]  ;;  %v624_v21 = vld [vmem:[#allocation8 + $0x38] sm:$0xff] }
 0x164   : > { %2038 = vmatprep.subr.bf16.mxu1 %v2764_v0  ;;  %v2042_v19 = vpack.c.bf16 %v714_v17, %v713_v16  ;;  %v715_v22 = vld [vmem:[#allocation10 + $0x30] sm:$0xff]  ;;  %v716_v23 = vld [vmem:[#allocation10 + $0x38] sm:$0xff]  ;;  %v2021_v24 = vpack.c.bf16 %v624_v21, %v623_v20  ;;  %v625_v26 = vld [vmem:[#allocation8 + $0x40] sm:$0xff] }
 0x165   : > { %v2045_v25 = vpack.c.bf16 %v716_v23, %v715_v22  ;;  %v626_v27 = vld [vmem:[#allocation8 + $0x48] sm:$0xff]  ;;  %v717_v28 = vld [vmem:[#allocation10 + $0x40] sm:$0xff]  ;;  %v627_v32 = vld [vmem:[#allocation8 + $0x50] sm:$0xff] }
 0x166   : > { %2016 = vmatpush3.bf16.msra.mxu0 %v2015_v12  ;;  %v718_v29 = vld [vmem:[#allocation10 + $0x48] sm:$0xff]  ;;  %v2024_v30 = vpack.c.bf16 %v626_v27, %v625_v26  ;;  %v628_v33 = vld [vmem:[#allocation8 + $0x58] sm:$0xff]  ;;  %v719_v34 = vld [vmem:[#allocation10 + $0x50] sm:$0xff]  ;;  %p3500_p12 = scmp.ne.s32.totalorder %s3498_s12, 0 }
 0x167   : > { %2040 = vmatpush3.bf16.msra.mxu1 %v2039_v13  ;;  %2017 = vmatprep.subr.bf16.mxu0 %v2764_v0  ;;  %v2048_v31 = vpack.c.bf16 %v718_v29, %v717_v28  ;;  %v720_v35 = vld [vmem:[#allocation10 + $0x58] sm:$0xff]  ;;  %v2027_v36 = vpack.c.bf16 %v628_v33, %v627_v32  ;;  %v629_v38 = vld [vmem:[#allocation8 + $0x60] sm:$0xff]  ;;  %v630_v39 = vld [vmem:[#allocation8 + $0x68] sm:$0xff] }
 0x168   : > { %2041 = vmatprep.subr.bf16.mxu1 %v2764_v0  ;;  %v2051_v37 = vpack.c.bf16 %v720_v35, %v719_v34  ;;  %v721_v40 = vld [vmem:[#allocation10 + $0x60] sm:$0xff]  ;;  %v722_v41 = vld [vmem:[#allocation10 + $0x68] sm:$0xff]  ;;  %v2030_v42 = vpack.c.bf16 %v630_v39, %v629_v38  ;;  %v631_v44 = vld [vmem:[#allocation8 + $0x70] sm:$0xff] }
 0x169   : > { %v2054_v43 = vpack.c.bf16 %v722_v41, %v721_v40  ;;  %v632_v45 = vld [vmem:[#allocation8 + $0x78] sm:$0xff]  ;;  %v723_v46 = vld [vmem:[#allocation10 + $0x70] sm:$0xff]  ;;  %v801_v50 = vld [vmem:[#allocation11] sm:$0xff] }
 0x16a   : > { %2019 = vmatpush3.bf16.msra.mxu0 %v2018_v18  ;;  %v724_v47 = vld [vmem:[#allocation10 + $0x78] sm:$0xff]  ;;  %v2033_v48 = vpack.c.bf16 %v632_v45, %v631_v44  ;;  %v802_v51 = vld [vmem:[#allocation11 + $0x8] sm:$0xff]  ;;  %v908_v52 = vld [vmem:[#allocation14] sm:$0xff] }
 0x16b   : > { %2043 = vmatpush3.bf16.msra.mxu1 %v2042_v19  ;;  %2020 = vmatprep.subr.bf16.mxu0 %v2764_v0  ;;  %v2057_v49 = vpack.c.bf16 %v724_v47, %v723_v46  ;;  %v909_v53 = vld [vmem:[#allocation14 + $0x8] sm:$0xff]  ;;  %v616_v54 = vld [vmem:[%s515_s25] sm:$0xff]  ;;  %v2060_v55 = vpack.c.bf16 %v802_v51, %v801_v50  ;;  %v805_v63 = vld [vmem:[#allocation11 + $0x20] sm:$0xff]  ;;  %s615_s25 = scalar_lea.vmem [#allocation20], %s3210_s18  ;;  %s2667_s18 = sshll.u32 %s2767_s27, 4  ;;  %s2668_s18 = int_to_ptr.vmem [resolvable:$false] %s2667_s18 }
 0x16c   : > { %2044 = vmatprep.subr.bf16.mxu1 %v2764_v0  ;;  %v708_v56 = vld [vmem:[%s524_s5] sm:$0xff]  ;;  %v803_v57 = vld [vmem:[#allocation11 + $0x10] sm:$0xff]  ;;  %v804_v58 = vld [vmem:[#allocation11 + $0x18] sm:$0xff]  ;;  %v2084_v59 = vpack.c.bf16 %v909_v53, %v908_v52  ;;  %s1365_s7 = sshll.u32 %s615_s25, 4  ;;  %s2669_s24 = scalar_lea.vmem %s2668_s18, 256  ;;  %s3365_s7 = int_to_ptr.vmem [resolvable:$true] %s1365_s7 }
 0x16d   : > { %v910_v60 = vld [vmem:[#allocation14 + $0x10] sm:$0xff]  ;;  %v911_v61 = vld [vmem:[#allocation14 + $0x18] sm:$0xff]  ;;  %v2063_v62 = vpack.c.bf16 %v804_v58, %v803_v57  ;;  %v806_v2 = vld [vmem:[#allocation11 + $0x28] sm:$0xff]  ;;  %s2663_s17 = scalar_lea.vmem %s3365_s7, 128  ;;  %p2670_p2 = scmp.lt.s32.totalorder %s3365_s7, %s2668_s18 }
 0x16e   : > { %2022 = vmatpush3.bf16.msra.mxu0 %v2021_v24  ;;  %v2087_v3 = vpack.c.bf16 %v911_v61, %v910_v60  ;;  %v912_v4 = vld [vmem:[#allocation14 + $0x20] sm:$0xff]  ;;  %v913_v5 = vld [vmem:[#allocation14 + $0x28] sm:$0xff]  ;;  %v2066_v6 = vpack.c.bf16 %v806_v2, %v805_v63  ;;  %v807_v7 = vld [vmem:[#allocation11 + $0x30] sm:$0xff]  ;;  %p2664_p8 = scmp.ne.s32.totalorder %s3365_s7, %s2663_s17  ;;  %p2671_p1 = scmp.lt.s32.totalorder %s2669_s24, %s2663_s17 }
 0x16f   : > { %2046 = vmatpush3.bf16.msra.mxu1 %v2045_v25  ;;  %2023 = vmatprep.subr.bf16.mxu0 %v2764_v0  ;;  %v808_v8 = vld [vmem:[#allocation11 + $0x38] sm:$0xff]  ;;  %v2090_v9 = vpack.c.bf16 %v913_v5, %v912_v4  ;;  %v914_v10 = vld [vmem:[#allocation14 + $0x30] sm:$0xff]  ;;  %v809_v13 = vld [vmem:[#allocation11 + $0x40] sm:$0xff] }
 0x170   : > { %2047 = vmatprep.subr.bf16.mxu1 %v2764_v0  ;;  %v915_v11 = vld [vmem:[#allocation14 + $0x38] sm:$0xff]  ;;  %v2069_v12 = vpack.c.bf16 %v808_v8, %v807_v7  ;;  %v810_v14 = vld [vmem:[#allocation11 + $0x48] sm:$0xff]  ;;  %v916_v16 = vld [vmem:[#allocation14 + $0x40] sm:$0xff]  ;;  %p2665_p4 = pnand %p2664_p8, %p3500_p12  ;;  %p2672_p11 = por %p2671_p1, %p2670_p2 }
 0x171   : > { %v2093_v15 = vpack.c.bf16 %v915_v11, %v914_v10  ;;  %v917_v17 = vld [vmem:[#allocation14 + $0x48] sm:$0xff]  ;;  %v2072_v18 = vpack.c.bf16 %v810_v14, %v809_v13  ;;  %v811_v19 = vld [vmem:[#allocation11 + $0x50] sm:$0xff]  ;;  %v812_v20 = vld [vmem:[#allocation11 + $0x58] sm:$0xff] }
 0x172   : > { %2025 = vmatpush3.bf16.msra.mxu0 %v2024_v30  ;;  %v2096_v21 = vpack.c.bf16 %v917_v17, %v916_v16  ;;  %v918_v22 = vld [vmem:[#allocation14 + $0x50] sm:$0xff]  ;;  %v919_v23 = vld [vmem:[#allocation14 + $0x58] sm:$0xff]  ;;  %v2075_v24 = vpack.c.bf16 %v812_v20, %v811_v19  ;;  %v813_v25 = vld [vmem:[#allocation11 + $0x60] sm:$0xff]  ;;  %p2666_p10 = pneg %p2665_p4 }
 0x173   : > { %2049 = vmatpush3.bf16.msra.mxu1 %v2048_v31  ;;  %2026 = vmatprep.subr.bf16.mxu0 %v2764_v0  ;;  %v814_v26 = vld [vmem:[#allocation11 + $0x68] sm:$0xff]  ;;  %v2099_v27 = vpack.c.bf16 %v919_v23, %v918_v22  ;;  %v920_v28 = vld [vmem:[#allocation14 + $0x60] sm:$0xff]  ;;  %v815_v31 = vld [vmem:[#allocation11 + $0x70] sm:$0xff] }
 0x174   : > { %2050 = vmatprep.subr.bf16.mxu1 %v2764_v0  ;;  %v921_v29 = vld [vmem:[#allocation14 + $0x68] sm:$0xff]  ;;  %v2078_v30 = vpack.c.bf16 %v814_v26, %v813_v25  ;;  %v816_v32 = vld [vmem:[#allocation11 + $0x78] sm:$0xff]  ;;  %v892_v35 = vld [vmem:[#allocation13] sm:$0xff]  ;;  %p2673_p3 = pnand %p2672_p11, %p2666_p10 }
 0x175   : > { %v2102_v33 = vpack.c.bf16 %v921_v29, %v920_v28  ;;  %v2081_v34 = vpack.c.bf16 %v816_v32, %v815_v31  ;;  %v894_v39 = vld [vmem:[#allocation13 + $0x10] sm:$0xff]  ;;  %v895_v40 = vld [vmem:[#allocation13 + $0x18] sm:$0xff]  ;;  %v1064_v2 = vld [vmem:[#allocation16] sm:$0xff] }
 0x176   : > { %2028 = vmatpush3.bf16.msra.mxu0 %v2027_v36  ;;  %v893_v36 = vld [vmem:[#allocation13 + $0x8] sm:$0xff]  ;;  %v2111_v41 = vpack.c.bf16 %v895_v40, %v894_v39  ;;  %v898_v45 = vld [vmem:[#allocation13 + $0x30] sm:$0xff]  ;;  %v899_v46 = vld [vmem:[#allocation13 + $0x38] sm:$0xff] }
 0x177   : > { %2052 = vmatpush3.bf16.msra.mxu1 %v2051_v37  ;;  %2029 = vmatprep.subr.bf16.mxu0 %v2764_v0  ;;  %v800_v37 = vld [vmem:[%s533_s30] sm:$0xff]  ;;  %v2108_v38 = vpack.c.bf16 %v893_v36, %v892_v35  ;;  %v2117_v47 = vpack.c.bf16 %v899_v46, %v898_v45  ;;  %v1069_v16 = vld [vmem:[#allocation16 + $0x28] sm:$0xff]  ;;  %s3499_s30 = sld [smem:[#allocation42_spill]] }
 0x178   : > { %2053 = vmatprep.subr.bf16.mxu1 %v2764_v0  ;;  %v902_v51 = vld [vmem:[#allocation13 + $0x50] sm:$0xff]  ;;  %v903_v52 = vld [vmem:[#allocation13 + $0x58] sm:$0xff]  ;;  %v1073_v22 = vld [vmem:[#allocation16 + $0x48] sm:$0xff] }
 0x179   : > { %v2123_v53 = vpack.c.bf16 %v903_v52, %v902_v51  ;;  %v922_v57 = vld [vmem:[#allocation14 + $0x70] sm:$0xff]  ;;  %v923_v58 = vld [vmem:[#allocation14 + $0x78] sm:$0xff]  ;;  %v1077_v28 = vld [vmem:[#allocation16 + $0x68] sm:$0xff] }
 0x17a   : > { %2031 = vmatpush3.bf16.msra.mxu0 %v2030_v42  ;;  %v896_v42 = vld [vmem:[#allocation13 + $0x20] sm:$0xff]  ;;  %v2105_v60 = vpack.c.bf16 %v923_v58, %v922_v57  ;;  %v907_v61 = vld [vmem:[#allocation13 + $0x78] sm:$0xff]  ;;  %v1584_v63 = vld [vmem:[%s3497_s1] ss:$0 sm:$0xff] }
 0x17b   : > { %2055 = vmatpush3.bf16.msra.mxu1 %v2054_v43  ;;  %2032 = vmatprep.subr.bf16.mxu0 %v2764_v0  ;;  %v897_v43 = vld [vmem:[#allocation13 + $0x28] sm:$0xff]  ;;  %v1585_v4 = vld [vmem:[%s3497_s1 + $0x1] ss:$0 sm:$0xff]  ;;  %v1067_v13 = vld [vmem:[#allocation16 + $0x18] sm:$0xff] }
 0x17c   : > { %2056 = vmatprep.subr.bf16.mxu1 %v2764_v0  ;;  %v2114_v44 = vpack.c.bf16 %v897_v43, %v896_v42  ;;  %v1071_v19 = vld [vmem:[#allocation16 + $0x38] sm:$0xff]  ;;  %v1160_v39 = vld [vmem:[#allocation17 + $0x10] sm:$0xff]  ;;  %v1162_v43 = vld [vmem:[#allocation17 + $0x20] sm:$0xff] }
 0x17d   : > { %v1075_v25 = vld [vmem:[#allocation16 + $0x58] sm:$0xff]  ;;  %v1164_v46 = vld [vmem:[#allocation17 + $0x30] sm:$0xff]  ;;  %s3363_s14 = scalar_lea.hbm %s3499_s30, %s1592_s3 }
 0x17e   : > { %2034 = vmatpush3.bf16.msra.mxu0 %v2033_v48  ;;  %v900_v48 = vld [vmem:[#allocation13 + $0x40] sm:$0xff]  ;;  %v1079_v31 = vld [vmem:[#allocation16 + $0x78] sm:$0xff]  ;;  %v1168_v51 = vld [vmem:[#allocation17 + $0x50] sm:$0xff] }
 0x17f   : > { %2058 = vmatpush3.bf16.msra.mxu1 %v2057_v49  ;;  %2059 = vmatprep.subr.bf16.mxu0 %v2764_v0  ;;  %v901_v49 = vld [vmem:[#allocation13 + $0x48] sm:$0xff]  ;;  %v1169_v52 = vld [vmem:[#allocation17 + $0x58] sm:$0xff]  ;;  %v1172_v57 = vld [vmem:[#allocation17 + $0x70] sm:$0xff] }
 0x180   : > { %2083 = vmatprep.subr.bf16.mxu1 %v2764_v0  ;;  %v2120_v50 = vpack.c.bf16 %v901_v49, %v900_v48  ;;  %v1167_v49 = vld [vmem:[#allocation17 + $0x48] sm:$0xff]  ;;  %v1173_v58 = vld [vmem:[#allocation17 + $0x78] sm:$0xff] }
 0x181   : > { %1764 = vmatmul.mubr.f32.vlgmr.msra.gmra.mrb[0].mxu0 %v616_v54  ;;  %v904_v54 = vld [vmem:[#allocation13 + $0x60] sm:$0xff] }
 0x182   : > { %1799 = vmatmul.mubr.f32.vlgmr.msra.gmra.mrb[0].mxu1 %v708_v56  ;;  %2061 = vmatpush3.bf16.msra.mxu0 %v2060_v55  ;;  %v905_v55 = vld [vmem:[#allocation13 + $0x68] sm:$0xff] }
 0x183   : > { %2062 = vmatprep.subr.bf16.mxu0 %v2764_v0  ;;  %1833 = vmatprep.mubr.msk.f32.mxu0 %vm2765_vm0, %v2766_v1  ;;  %v2126_v56 = vpack.c.bf16 %v905_v55, %v904_v54  ;;  %v1170_v54 = vld [vmem:[#allocation17 + $0x60] sm:$0xff]  ;;  %v1171_v55 = vld [vmem:[#allocation17 + $0x68] sm:$0xff] }
 0x184   : > { %2085 = vmatpush3.bf16.msra.mxu1 %v2084_v59  ;;  %1868 = vmatprep.mubr.msk.f32.mxu1 %vm2765_vm0, %v2766_v1  ;;  %v906_v59 = vld [vmem:[#allocation13 + $0x70] sm:$0xff] }
 0x185   : > { %2086 = vmatprep.subr.bf16.mxu1 %v2764_v0 }
 0x186   : > { %2064 = vmatpush3.bf16.msra.mxu0 %v2063_v62  ;;  %v2129_v62 = vpack.c.bf16 %v907_v61, %v906_v59  ;;  %v2177_v59 = vpack.c.bf16 %v1173_v58, %v1172_v57 }
 0x187   : > { %2065 = vmatprep.subr.bf16.mxu0 %v2764_v0 }
 0x188   : > { %2088 = vmatpush3.bf16.msra.mxu1 %v2087_v3  ;;  %v1065_v3 = vld [vmem:[#allocation16 + $0x8] sm:$0xff] }
 0x189   : > { %2089 = vmatprep.subr.bf16.mxu1 %v2764_v0 }
 0x18a   : > { %2067 = vmatpush3.bf16.msra.mxu0 %v2066_v6 }
 0x18b   : > { %2068 = vmatprep.subr.bf16.mxu0 %v2764_v0 }
 0x18c   : > { %2091 = vmatpush3.bf16.msra.mxu1 %v2090_v9  ;;  %v2132_v9 = vpack.c.bf16 %v1065_v3, %v1064_v2 }
 0x18d   : > { %2092 = vmatprep.subr.bf16.mxu1 %v2764_v0 }
 0x18e   : > { %2070 = vmatpush3.bf16.msra.mxu0 %v2069_v12  ;;  %v1066_v12 = vld [vmem:[#allocation16 + $0x10] sm:$0xff] }
 0x18f   : > { %2071 = vmatprep.subr.bf16.mxu0 %v2764_v0  ;;  %v2135_v14 = vpack.c.bf16 %v1067_v13, %v1066_v12  ;;  %v1260_v12 = vld [vmem:[#allocation19 + $0x8] sm:$0xff] }
 0x190   : > { %2094 = vmatpush3.bf16.msra.mxu1 %v2093_v15  ;;  %v1068_v15 = vld [vmem:[#allocation16 + $0x20] sm:$0xff] }
 0x191   : > { %2095 = vmatprep.subr.bf16.mxu1 %v2764_v0  ;;  %v2138_v17 = vpack.c.bf16 %v1069_v16, %v1068_v15  ;;  %v1262_v15 = vld [vmem:[#allocation19 + $0x18] sm:$0xff] }
 0x192   : > { %2073 = vmatpush3.bf16.msra.mxu0 %v2072_v18  ;;  %v1070_v18 = vld [vmem:[#allocation16 + $0x30] sm:$0xff] }
 0x193   : > { %2074 = vmatprep.subr.bf16.mxu0 %v2764_v0  ;;  %v2141_v20 = vpack.c.bf16 %v1071_v19, %v1070_v18  ;;  %v1264_v18 = vld [vmem:[#allocation19 + $0x28] sm:$0xff] }
 0x194   : > { %2097 = vmatpush3.bf16.msra.mxu1 %v2096_v21  ;;  %v1072_v21 = vld [vmem:[#allocation16 + $0x40] sm:$0xff] }
 0x195   : > { %2098 = vmatprep.subr.bf16.mxu1 %v2764_v0  ;;  %v2144_v23 = vpack.c.bf16 %v1073_v22, %v1072_v21  ;;  %v1266_v21 = vld [vmem:[#allocation19 + $0x38] sm:$0xff] }
 0x196   : > { %2076 = vmatpush3.bf16.msra.mxu0 %v2075_v24  ;;  %v1074_v24 = vld [vmem:[#allocation16 + $0x50] sm:$0xff] }
 0x197   : > { %2077 = vmatprep.subr.bf16.mxu0 %v2764_v0  ;;  %v2147_v26 = vpack.c.bf16 %v1075_v25, %v1074_v24  ;;  %v1268_v24 = vld [vmem:[#allocation19 + $0x48] sm:$0xff] }
 0x198   : > { %2100 = vmatpush3.bf16.msra.mxu1 %v2099_v27  ;;  %v1076_v27 = vld [vmem:[#allocation16 + $0x60] sm:$0xff] }
 0x199   : > { %2101 = vmatprep.subr.bf16.mxu1 %v2764_v0  ;;  %v2150_v29 = vpack.c.bf16 %v1077_v28, %v1076_v27  ;;  %v1270_v27 = vld [vmem:[#allocation19 + $0x58] sm:$0xff] }
 0x19a   : > { %2079 = vmatpush3.bf16.msra.mxu0 %v2078_v30  ;;  %v1078_v30 = vld [vmem:[#allocation16 + $0x70] sm:$0xff] }
 0x19b   : > { %2080 = vmatprep.subr.bf16.mxu0 %v2764_v0  ;;  %v2153_v32 = vpack.c.bf16 %v1079_v31, %v1078_v30  ;;  %v1272_v30 = vld [vmem:[#allocation19 + $0x68] sm:$0xff] }
 0x19c   : > { %2103 = vmatpush3.bf16.msra.mxu1 %v2102_v33  ;;  %v1586_v33 = vld [vmem:[%s3497_s1 + $0x2] ss:$0 sm:$0xff] }
 0x19d   : > { %2104 = vmatprep.subr.bf16.mxu1 %v2764_v0 }
 0x19e   : > { %2082 = vmatpush3.bf16.msra.mxu0 %v2081_v34 }
 0x19f   : > { %2107 = vmatprep.subr.bf16.mxu0 %v2764_v0 }
 0x1a0   : > { %2106 = vmatpush3.bf16.msra.mxu1 %v2105_v60 }
 0x1a1   : > { %1834 = vmatmul.mubr.f32.vlgmr.msra.gmra.mrb[2].mxu0 %v800_v37  ;;  %2131 = vmatprep.subr.bf16.mxu1 %v2764_v0  ;;  %v1158_v37 = vld [vmem:[#allocation17] sm:$0xff] }
 0x1a2   : > { %2109 = vmatpush3.bf16.msra.mxu0 %v2108_v38  ;;  %1903 = vmatprep.mubr.msk.f32.mxu0 %vm2765_vm0, %v2766_v1  ;;  %v1159_v38 = vld [vmem:[#allocation17 + $0x8] sm:$0xff] }
 0x1a3   : > { %2110 = vmatprep.subr.bf16.mxu0 %v2764_v0  ;;  %v2156_v40 = vpack.c.bf16 %v1159_v38, %v1158_v37 }
 0x1a6   : > { %2112 = vmatpush3.bf16.msra.mxu0 %v2111_v41  ;;  %v1161_v41 = vld [vmem:[#allocation17 + $0x18] sm:$0xff] }
 0x1a7   : > { %2113 = vmatprep.subr.bf16.mxu0 %v2764_v0  ;;  %v2159_v42 = vpack.c.bf16 %v1161_v41, %v1160_v39 }
 0x1aa   : > { %2115 = vmatpush3.bf16.msra.mxu0 %v2114_v44  ;;  %v1163_v44 = vld [vmem:[#allocation17 + $0x28] sm:$0xff] }
 0x1ab   : > { %2116 = vmatprep.subr.bf16.mxu0 %v2764_v0  ;;  %v2162_v45 = vpack.c.bf16 %v1163_v44, %v1162_v43 }
 0x1ae   : > { %2118 = vmatpush3.bf16.msra.mxu0 %v2117_v47  ;;  %v1165_v47 = vld [vmem:[#allocation17 + $0x38] sm:$0xff] }
 0x1af   : > { %2119 = vmatprep.subr.bf16.mxu0 %v2764_v0  ;;  %v2165_v48 = vpack.c.bf16 %v1165_v47, %v1164_v46  ;;  %v1590_v47 = vld [vmem:[%s3497_s1 + $0x5] ss:$0 sm:$0xff] }
 0x1b2   : > { %2121 = vmatpush3.bf16.msra.mxu0 %v2120_v50 }
 0x1b3   : > { %2122 = vmatprep.subr.bf16.mxu0 %v2764_v0 }
 0x1b6   : > { %2124 = vmatpush3.bf16.msra.mxu0 %v2123_v53  ;;  %v2171_v53 = vpack.c.bf16 %v1169_v52, %v1168_v51 }
 0x1b7   : > { %2125 = vmatprep.subr.bf16.mxu0 %v2764_v0 }
 0x1ba   : > { %2127 = vmatpush3.bf16.msra.mxu0 %v2126_v56  ;;  %v2174_v56 = vpack.c.bf16 %v1171_v55, %v1170_v54 }
 0x1bb   : > { %2128 = vmatprep.subr.bf16.mxu0 %v2764_v0 }
 0x1be   : > { %2130 = vmatpush3.bf16.msra.mxu0 %v2129_v62 }
 0x1bf   : > { %2155 = vmatprep.subr.bf16.mxu0 %v2764_v0 }
 0x254   : > { %v704_v5 = vpop.f32.mrb[0].mxu0 }
 0x255   : > { %v3305_v6 = vadd.f32 %v1584_v63, %v704_v5  ;;  %v796_v7 = vpop.f32.mrb[0].mxu1  ;;  %v1765_v8 = vpop.f32.mrb[1].mxu0 }
 0x256   : > { %v3307_v10 = vadd.f32 %v1585_v4, %v796_v7  ;;  %v1800_v11 = vpop.f32.mrb[1].mxu1  ;;  %v1587_v4 = vld [vmem:[%s3497_s1 + $0x3] ss:$0 sm:$0xff] }
 0x257   : > { %1904 = vmatmul.mubr.f32.vlgmr.msra.gmra.mrb[4].mxu0 %v3305_v6  ;;  %v1259_v11 = vld [vmem:[#allocation19] sm:$0xff] }
 0x258   : > { %1869 = vmatmul.mubr.f32.vlgmr.msra.gmra.mrb[2].mxu1 %v3307_v10  ;;  %1973 = vmatprep.mubr.msk.f32.mxu0 %vm2765_vm0, %v2766_v1  ;;  %v2180_v13 = vpack.c.bf16 %v1260_v12, %v1259_v11  ;;  %v1255_v43 = vsub.f32 %v3305_v6, %v3307_v10 }
 0x259   : > { %2133 = vmatpush3.bf16.msra.mxu1 %v2132_v9  ;;  %1938 = vmatprep.mubr.msk.f32.mxu1 %vm2765_vm0, %v2766_v1 }
 0x25a   : > { %2134 = vmatprep.subr.bf16.mxu1 %v2764_v0  ;;  %2157 = vmatpush3.bf16.msra.mxu0 %v2156_v40 }
 0x25b   : > { %2158 = vmatprep.subr.bf16.mxu0 %v2764_v0 }
 0x25d   : > { %2136 = vmatpush3.bf16.msra.mxu1 %v2135_v14  ;;  %v1261_v14 = vld [vmem:[#allocation19 + $0x10] sm:$0xff] }
 0x25e   : > { %2137 = vmatprep.subr.bf16.mxu1 %v2764_v0  ;;  %2160 = vmatpush3.bf16.msra.mxu0 %v2159_v42  ;;  %v2183_v16 = vpack.c.bf16 %v1262_v15, %v1261_v14 }
 0x25f   : > { %2161 = vmatprep.subr.bf16.mxu0 %v2764_v0 }
 0x261   : > { %2139 = vmatpush3.bf16.msra.mxu1 %v2138_v17  ;;  %v1263_v17 = vld [vmem:[#allocation19 + $0x20] sm:$0xff] }
 0x262   : > { %2140 = vmatprep.subr.bf16.mxu1 %v2764_v0  ;;  %2163 = vmatpush3.bf16.msra.mxu0 %v2162_v45  ;;  %v2186_v19 = vpack.c.bf16 %v1264_v18, %v1263_v17 }
 0x263   : > { %2164 = vmatprep.subr.bf16.mxu0 %v2764_v0 }
 0x265   : > { %2142 = vmatpush3.bf16.msra.mxu1 %v2141_v20  ;;  %v1265_v20 = vld [vmem:[#allocation19 + $0x30] sm:$0xff] }
 0x266   : > { %2143 = vmatprep.subr.bf16.mxu1 %v2764_v0  ;;  %2166 = vmatpush3.bf16.msra.mxu0 %v2165_v48  ;;  %v2189_v22 = vpack.c.bf16 %v1266_v21, %v1265_v20 }
 0x267   : > { %2167 = vmatprep.subr.bf16.mxu0 %v2764_v0 }
 0x269   : > { %2145 = vmatpush3.bf16.msra.mxu1 %v2144_v23  ;;  %v1267_v23 = vld [vmem:[#allocation19 + $0x40] sm:$0xff] }
 0x26a   : > { %2146 = vmatprep.subr.bf16.mxu1 %v2764_v0  ;;  %v2192_v25 = vpack.c.bf16 %v1268_v24, %v1267_v23 }
 0x26d   : > { %2148 = vmatpush3.bf16.msra.mxu1 %v2147_v26  ;;  %v1269_v26 = vld [vmem:[#allocation19 + $0x50] sm:$0xff] }
 0x26e   : > { %2149 = vmatprep.subr.bf16.mxu1 %v2764_v0  ;;  %v2195_v28 = vpack.c.bf16 %v1270_v27, %v1269_v26 }
 0x271   : > { %2151 = vmatpush3.bf16.msra.mxu1 %v2150_v29  ;;  %v1271_v29 = vld [vmem:[#allocation19 + $0x60] sm:$0xff] }
 0x272   : > { %2152 = vmatprep.subr.bf16.mxu1 %v2764_v0  ;;  %v2198_v31 = vpack.c.bf16 %v1272_v30, %v1271_v29 }
 0x274   : > { %v888_v34 = vpop.f32.mrb[2].mxu0 }
 0x275   : > { %v3325_v35 = vadd.f32 %v1586_v33, %v888_v34  ;;  %2154 = vmatpush3.bf16.msra.mxu1 %v2153_v32  ;;  %v1835_v36 = vpop.f32.mrb[3].mxu0  ;;  %v1273_v32 = vld [vmem:[#allocation19 + $0x70] sm:$0xff]  ;;  %v1274_v33 = vld [vmem:[#allocation19 + $0x78] sm:$0xff] }
 0x276   : > { %2179 = vmatprep.subr.bf16.mxu1 %v2764_v0  ;;  %v2201_v34 = vpack.c.bf16 %v1274_v33, %v1273_v32  ;;  %v1588_v36 = vld [vmem:[%s3497_s1 + $0x4] ss:$0 sm:$0xff] }
 0x278   : > { %1939 = vmatmul.mubr.f32.vlgmr.msra.gmra.mrb[4].mxu1 %v3325_v35 }
 0x279   : > { %2008 = vmatprep.mubr.msk.f32.mxu1 %vm2765_vm0, %v2766_v1  ;;  %v1166_v1 = vld [vmem:[#allocation17 + $0x40] sm:$0xff]  ;;  %2181 = vmatpush3.bf16.msra.mxu1 %v2180_v13 }
 0x27a   : > { %v2168_v50 = vpack.c.bf16 %v1167_v49, %v1166_v1  ;;  %2182 = vmatprep.subr.bf16.mxu1 %v2764_v0 }
 0x27c   : > { %2169 = vmatpush3.bf16.msra.mxu0 %v2168_v50 }
 0x27d   : > { %2170 = vmatprep.subr.bf16.mxu0 %v2764_v0  ;;  %2184 = vmatpush3.bf16.msra.mxu1 %v2183_v16 }
 0x27e   : > { %2185 = vmatprep.subr.bf16.mxu1 %v2764_v0 }
 0x280   : > { %2172 = vmatpush3.bf16.msra.mxu0 %v2171_v53 }
 0x281   : > { %2173 = vmatprep.subr.bf16.mxu0 %v2764_v0  ;;  %2187 = vmatpush3.bf16.msra.mxu1 %v2186_v19 }
 0x282   : > { %2188 = vmatprep.subr.bf16.mxu1 %v2764_v0 }
 0x284   : > { %2175 = vmatpush3.bf16.msra.mxu0 %v2174_v56 }
 0x285   : > { %2176 = vmatprep.subr.bf16.mxu0 %v2764_v0  ;;  %2190 = vmatpush3.bf16.msra.mxu1 %v2189_v22 }
 0x286   : > { %2191 = vmatprep.subr.bf16.mxu1 %v2764_v0 }
 0x288   : > { %2178 = vmatpush3.bf16.msra.mxu0 %v2177_v59 }
 0x289   : > { %2193 = vmatpush3.bf16.msra.mxu1 %v2192_v25 }
 0x28a   : > { %2194 = vmatprep.subr.bf16.mxu1 %v2764_v0 }
 0x28d   : > { %2196 = vmatpush3.bf16.msra.mxu1 %v2195_v28 }
 0x28e   : > { %2197 = vmatprep.subr.bf16.mxu1 %v2764_v0 }
 0x291   : > { %2199 = vmatpush3.bf16.msra.mxu1 %v2198_v31 }
 0x292   : > { %2200 = vmatprep.subr.bf16.mxu1 %v2764_v0 }
 0x295   : > { %2202 = vmatpush3.bf16.msra.mxu1 %v2201_v34 }
 0x32a   : > { %v1060_v60 = vpop.f32.mrb[4].mxu0 }
 0x32b   : > { %v990_v61 = vpop.f32.mrb[2].mxu1  ;;  %v1905_v62 = vpop.f32.mrb[5].mxu0 }
 0x32c   : > { %v1061_v63 = vadd.f32 %v1060_v60, %v990_v61  ;;  %v1870_v2 = vpop.f32.mrb[3].mxu1 }
 0x34b   : > { %v1146_v3 = vpop.f32.mrb[4].mxu1 }
 0x34c   : > { %v1150_v5 = vadd.f32 %v1146_v3, %v1061_v63  ;;  %v1940_v7 = vpop.f32.mrb[5].mxu1 }
 0x34e   : > { %v1156_v8 = vadd.f32 %v1587_v4, %v1150_v5 }
 0x350   : > { %v1157_v9 = vmax.f32 %v1156_v8, 0.0 }
 0x352   : > { %1974 = vmatmul.mubr.f32.vlgmr.msra.gmra.mrb[6].mxu0 %v1157_v9 }
 0x425   : > { %v1245_v37 = vpop.f32.mrb[6].mxu0 }
 0x426   : > { %v1246_v38 = vadd.f32 %v1588_v36, %v1245_v37  ;;  %v1975_v39 = vpop.f32.mrb[7].mxu0 }
 0x428   : > { %v1589_v40 = vmul.f32 -1.442695, %v1246_v38 }
 0x42a   : > { %2345 = vpow2.f32 %v1589_v40 }
 0x434   : > { %v2346_v41 = vpop.eup %2345 }
 0x435   : > { %v1252_v42 = vadd.f32 1.0, %v2346_v41 }
 0x437   : > { %2347 = vrcp.f32 %v1252_v42 }
 0x441   : > { %v2348_v0 = vpop.eup %2347 }
 0x442   : > { %v1256_v44 = vmul.f32 %v2348_v0, %v1255_v43 }
 0x444   : > { %v1257_v45 = vadd.f32 %v1256_v44, %v3307_v10 }
 0x446   : > { %v1258_v46 = vadd.f32 %v1257_v45, %v3325_v35 }
 0x448   : > { %2009 = vmatmul.mubr.f32.vlgmr.msra.gmra.mrb[6].mxu1 %v1258_v46 }
 0x51b   : > { %v1346_v48 = vpop.f32.mrb[6].mxu1 }
 0x51c   : > { %v1347_v1 = vadd.f32 %v1590_v47, %v1346_v48  ;;  %v2010_v49 = vpop.f32.mrb[7].mxu1 }
 0x51e   : > { %1350 = vst [vmem:[%s615_s25] sm:$0xff] %v1347_v1 }
 0x51f   : > { %2676 = shalt.err (!%p2673_p3)
}
 0x520   : > { %s2677_s19 = scalar_lea.hbm %s3363_s14, 128  ;;  %s2681_s16 = scalar_lea.hbm %s3499_s30, 256 }
 0x521   : > { %p2678_p0 = scmp.ne.s32.totalorder %s3363_s14, %s2677_s19  ;;  %p2682_p6 = scmp.lt.u32.totalorder %s3363_s14, %s3499_s30 }
 0x522   : > { %p2683_p13 = scmp.lt.u32.totalorder %s2681_s16, %s2677_s19  ;;  %p2685_p8 = scmp.lt.u32.totalorder %s2677_s19, %s3363_s14 }
 0x523   : > { %p2679_p5 = pnand %p2678_p0, %p3500_p12 }
 0x524   : > { %p2684_p7 = por %p2683_p13, %p2682_p6 }
 0x525   : > { %p2680_p9 = pneg %p2679_p5 }
 0x526   : > { %p2686_p4 = por %p2685_p8, %p2684_p7 }
 0x528   : > { %p2687_p10 = pnand %p2686_p4, %p2680_p9 }
 0x52a   : > { %2690 = shalt.err (!%p2687_p10)
}
 0x52b   : > { %2241 = dma.vmem_to_hbm [thread:$0]  (%p3500_p12), %s3365_s7, 128, %s3363_s14, %s1352_s29  }
 0x52c PF: > { %s3501_s26 = sld [smem:[#allocation28_spill]]  ;;  %s3502_s28 = sld [smem:[#allocation34_spill]] }
 0x52d   : > { %s3503_s11 = sld [smem:[#allocation29_spill]] }
 0x532   : > { %s1377_s3 = sand.u32 1, %s3501_s26   ;;  %p3504_p2 = scmp.ne.s32.totalorder %s3502_s28, 0 }
 0x533   : > { %p3505_p1 = scmp.ge.s32.totalorder %s3503_s11, 2  ;;  %s1378_s25 = scalar_lea.sflag [#allocation4], %s1377_s3 }
 0x535   : > { %p2279_p11 = pnand %p3505_p1, %p3504_p2 }
 0x537   : > { %2732 = dma.done.wait (!%p2279_p11), %s1378_s25, 128  }
 0x538   : > { %2734 = vsyncadd (!%p2279_p11), %s1378_s25, 4294967168  ;;  %s3506_s24 = sld [smem:[#allocation31_spill]]  ;;  %s3507_s2 = sld [smem:[#allocation32_spill]] }
 0x539   : > { %s3508_s21 = smov %s2741_s22  ;;  %s3509_s22 = smov %s2745_s23 }
 0x53e   : > { %p32_p3 = scmp.ge.s32.totalorder %s3506_s24, 4   ;;  %s3510_s23 = smov %s3507_s2 }
 0x540   :  { %34 = sbr.rel (!%p32_p3) target bundleno = 20 (0x14), region = 169 }
 0x547   :  { %1383 = vsyncpa [#allocation3], 1 }
 0x548   :  { %1385 = vsyncpa [#allocation3 + $0x1], 1 }
 0x549   :  { %1386 = vsyncpa [#allocation6], 1 }
 0x54a   :  { %1388 = vsyncpa [#allocation6 + $0x1], 1 }
 0x54b   :  { %1389 = vsyncpa [#allocation9], 1 }
 0x54c   :  { %1390 = vsyncpa [#allocation12], 1 }
 0x54d   :  { %1391 = vsyncpa [#allocation15], 1 }
 0x54e   :  { %1392 = vsyncpa [#allocation18], 1 }
 0x54f   :  { %1393 = vsyncpa [#allocation4], 1 }
 0x550   :  { %1395 = vsyncpa [#allocation4 + $0x1], 1 }

</bundles_post_ra>
